<compile_context>
chip_gen: v7x
topology: tpu7x:2x2x1
jax: 0.10.0
libtpu: 0.0.40
codegen_flags: <defaults>
</compile_context>

<pallas_src>
import functools

import jax
import jax.numpy as jnp
from jax import lax
from jax.experimental import pallas as pl
from jax.experimental.pallas import tpu as pltpu


def _lrn_kernel(x_ref, o_ref, *, H, W, C, ss, cs, alpha, beta):
    """One batch element, NHWC layout.

    x_ref: (1, H, W, C) input block (original dtype)
    o_ref: (1, H, W, C) output block
    """
    x = x_ref[0].astype(jnp.float32)          # (H, W, C)
    win = x * x                               # squared activations

    def wsum(a, size, axis):
        """Sliding-window sum of odd `size` along `axis`, zero boundaries
        (AvgPool count_include_pad=True semantics before the divide)."""
        if size == 1:
            return a
        p = (size - 1) // 2
        L = a.shape[axis]
        zshape = list(a.shape)
        zshape[axis] = p
        z = jnp.zeros(zshape, a.dtype)
        ap = jnp.concatenate([z, a, z], axis=axis)     # length L + 2p
        acc = lax.slice_in_dim(ap, 0, L, axis=axis)
        for d in range(1, size):
            acc = acc + lax.slice_in_dim(ap, d, d + L, axis=axis)
        return acc

    # Separable sliding-window sum over the (C, H, W) neighborhood.
    win = wsum(win, ss, axis=1)   # W window  (sublane shifts)
    win = wsum(win, ss, axis=0)   # H window  (untiled leading dim, cheap)
    win = wsum(win, cs, axis=2)   # C window  (lane shifts, XLU)

    # avg = win / (cs*ss*ss); t = alpha*avg + 1  (constants folded).
    scale = float(alpha) / float(cs * ss * ss)
    t = win * scale + 1.0
    if beta == 0.75:
        r = lax.rsqrt(t)                       # t^-0.5   (EUP)
        inv = r * jnp.sqrt(r)                  # t^-0.75
    elif beta == 0.5:
        inv = lax.rsqrt(t)
    elif beta == 1.0:
        inv = pl.reciprocal(t, approx=False)
    else:
        inv = jnp.exp(-float(beta) * jnp.log(t))   # generic fallback, t >= 1
    o_ref[0] = (x * inv).astype(o_ref.dtype)


def _padded_bytes(shape, itemsize):
    """Rough VMEM footprint of an array, accounting for (8,128) tile padding."""
    if len(shape) == 0:
        return itemsize
    if len(shape) == 1:
        return (-(-(shape[0] * itemsize) // 512)) * 512
    *lead, s, l = shape
    n = 1
    for d in lead:
        n *= d
    return n * (-(-s // 8) * 8) * (-(-l // 128) * 128) * itemsize


def lrn(x, *, channel_size=1, spatial_size=1, alpha=1.0, beta=0.75,
        across_channel_spatial=True):
    """Pallas implementation of LRN.forward for NCHW input `x` (returns NCHW)."""
    N, C, H, W = x.shape
    ss = int(spatial_size)
    sp = (ss - 1) // 2
    if across_channel_spatial:
        cs = int(channel_size)
        cp = (cs - 1) // 2
    else:
        cs, cp = 1, 0          # AvgPool2d path: no pooling across channels
    # The PyTorch module only preserves the spatial size (stride 1, (k-1)//2
    # padding) for odd window sizes; enforce that assumption explicitly.
    assert ss % 2 == 1 and cs % 2 == 1, "LRN: window sizes must be odd"

    # Lane-dense layout: NCHW -> NHWC (channels on the 128-lane axis).
    xt = jnp.transpose(x, (0, 2, 3, 1))        # (N, H, W, C)

    kernel = functools.partial(
        _lrn_kernel, H=H, W=W, C=C, ss=ss, cs=cs,
        alpha=float(alpha), beta=float(beta))

    # Size scoped VMEM from the real footprint: double-buffered in/out blocks
    # plus a handful of live f32 temporaries (largest has the halo along one
    # axis).
    blk = _padded_bytes((H, W, C), x.dtype.itemsize)
    blk_f32 = _padded_bytes((H, W + 2 * sp, C + 2 * cp), 4)
    est = 4 * blk + 8 * blk_f32 + (2 << 20)
    vmem_limit = int(min(64 * 1024 * 1024, max(est, 16 * 1024 * 1024)))

    out_t = pl.pallas_call(
        kernel,
        out_shape=jax.ShapeDtypeStruct((N, H, W, C), x.dtype),
        grid_spec=pltpu.PrefetchScalarGridSpec(
            num_scalar_prefetch=0,
            grid=(N,),
            in_specs=[pl.BlockSpec((1, H, W, C), lambda n: (n, 0, 0, 0))],
            out_specs=pl.BlockSpec((1, H, W, C), lambda n: (n, 0, 0, 0)),
        ),
        compiler_params=pltpu.CompilerParams(
            dimension_semantics=("parallel",),
            vmem_limit_bytes=vmem_limit),
    )(xt)
    return jnp.transpose(out_t, (0, 3, 1, 2))


def lrn_ref(x, *, channel_size, spatial_size, alpha, beta,
            across_channel_spatial):
    """Pure-JAX reference matching the PyTorch module semantics (NCHW)."""
    sp = (spatial_size - 1) // 2
    cp = (channel_size - 1) // 2
    sq = x.astype(jnp.float32) ** 2
    if across_channel_spatial:
        pads = ((0, 0), (cp, cp), (sp, sp), (sp, sp))
        kdims = (1, channel_size, spatial_size, spatial_size)
    else:
        pads = ((0, 0), (0, 0), (sp, sp), (sp, sp))
        kdims = (1, 1, spatial_size, spatial_size)
    sqp = jnp.pad(sq, pads)
    summed = lax.reduce_window(sqp, 0.0, lax.add, kdims, (1, 1, 1, 1), "VALID")
    avg = summed / float(kdims[1] * kdims[2] * kdims[3])
    div = (avg * alpha + 1.0) ** beta
    return (x.astype(jnp.float32) / div).astype(x.dtype)


if __name__ == "__main__":
    key = jax.random.PRNGKey(0)
    k1, k2 = jax.random.split(key)

    x = jax.random.normal(k1, (2, 4, 16, 16), dtype=jnp.float32)

    # Non-trivial config: pool over a 3x3x3 (channel, h, w) neighborhood.
    cfg = dict(channel_size=3, spatial_size=3, alpha=1.0, beta=0.75,
               across_channel_spatial=True)
    out = jax.block_until_ready(lrn(x, **cfg))
    ref = lrn_ref(x, **cfg)
    assert jnp.allclose(out, ref, atol=1e-4, rtol=1e-4), "mismatch (3x3x3 cfg)"

    # Default module config (channel_size=1, spatial_size=1) — pointwise LRN.
    cfg_default = dict(channel_size=1, spatial_size=1, alpha=1.0, beta=0.75,
                       across_channel_spatial=True)
    out_d = jax.block_until_ready(lrn(x, **cfg_default))
    ref_d = lrn_ref(x, **cfg_default)
    assert jnp.allclose(out_d, ref_d, atol=1e-4, rtol=1e-4), "mismatch (default cfg)"

    # AvgPool2d path (across_channel_spatial=False).
    cfg_2d = dict(channel_size=1, spatial_size=3, alpha=1.0, beta=0.75,
                  across_channel_spatial=False)
    out_2 = jax.block_until_ready(lrn(x, **cfg_2d))
    ref_2 = lrn_ref(x, **cfg_2d)
    assert jnp.allclose(out_2, ref_2, atol=1e-4, rtol=1e-4), "mismatch (2d cfg)"

    # Lane-dense configuration closer to real vonenet feature maps
    # (C = 128 sits exactly on the 128-wide lane axis), N = 1.
    x_big = jax.random.normal(k2, (1, 128, 16, 16), dtype=jnp.float32)
    out_b = jax.block_until_ready(lrn(x_big, **cfg))
    ref_b = lrn_ref(x_big, **cfg)
    assert jnp.allclose(out_b, ref_b, atol=1e-4, rtol=1e-4), "mismatch (C=128 cfg)"

    print("KERNEL_OK")
</pallas_src>

<mosaic_0001>
module attributes {stable_mosaic.version = 11 : i64} {
  func.func @_lrn_kernel(%arg0: i32, %arg1: memref<1x16x16x4xf32, #tpu.memory_space<vmem>>, %arg2: memref<1x16x16x4xf32, #tpu.memory_space<vmem>>) attributes {dimension_semantics = [#tpu.dimension_semantics<parallel>], iteration_bounds = array<i64: 2>, scalar_prefetch = 0 : i64, scratch_operands = 0 : i64, tpu.core_type = #tpu.core_type<tc>, window_params = [{transform_indices = @transform_0, window_bounds = array<i64: 1, 16, 16, 4>}, {transform_indices = @transform_1, window_bounds = array<i64: 1, 16, 16, 4>}]} {
    %c0 = arith.constant 0 : index
    %c0_0 = arith.constant 0 : index
    %c0_1 = arith.constant 0 : index
    %c0_2 = arith.constant 0 : index
    %0 = vector.load %arg1[%c0, %c0_0, %c0_1, %c0_2] : memref<1x16x16x4xf32, #tpu.memory_space<vmem>>, vector<1x16x16x4xf32>
    %1 = vector.shape_cast %0 : vector<1x16x16x4xf32> to vector<16x16x4xf32>
    %2 = arith.mulf %1, %1 : vector<16x16x4xf32>
    %cst = arith.constant 0.000000e+00 : f32
    %3 = vector.broadcast %cst : f32 to vector<16x1x4xf32>
    %4 = tpu.concatenate %3, %2, %3 in 1 : vector<16x1x4xf32>, vector<16x16x4xf32>, vector<16x1x4xf32> -> vector<16x18x4xf32>
    %5 = vector.extract_strided_slice %4 {offsets = [0, 0, 0], sizes = [16, 16, 4], strides = [1, 1, 1]} : vector<16x18x4xf32> to vector<16x16x4xf32>
    %6 = vector.extract_strided_slice %4 {offsets = [0, 1, 0], sizes = [16, 16, 4], strides = [1, 1, 1]} : vector<16x18x4xf32> to vector<16x16x4xf32>
    %7 = arith.addf %5, %6 : vector<16x16x4xf32>
    %8 = vector.extract_strided_slice %4 {offsets = [0, 2, 0], sizes = [16, 16, 4], strides = [1, 1, 1]} : vector<16x18x4xf32> to vector<16x16x4xf32>
    %9 = arith.addf %7, %8 : vector<16x16x4xf32>
    %cst_3 = arith.constant 0.000000e+00 : f32
    %10 = vector.broadcast %cst_3 : f32 to vector<1x16x4xf32>
    %11 = tpu.concatenate %10, %9, %10 in 0 : vector<1x16x4xf32>, vector<16x16x4xf32>, vector<1x16x4xf32> -> vector<18x16x4xf32>
    %12 = vector.extract_strided_slice %11 {offsets = [0, 0, 0], sizes = [16, 16, 4], strides = [1, 1, 1]} : vector<18x16x4xf32> to vector<16x16x4xf32>
    %13 = vector.extract_strided_slice %11 {offsets = [1, 0, 0], sizes = [16, 16, 4], strides = [1, 1, 1]} : vector<18x16x4xf32> to vector<16x16x4xf32>
    %14 = arith.addf %12, %13 : vector<16x16x4xf32>
    %15 = vector.extract_strided_slice %11 {offsets = [2, 0, 0], sizes = [16, 16, 4], strides = [1, 1, 1]} : vector<18x16x4xf32> to vector<16x16x4xf32>
    %16 = arith.addf %14, %15 : vector<16x16x4xf32>
    %cst_4 = arith.constant 0.000000e+00 : f32
    %17 = vector.broadcast %cst_4 : f32 to vector<16x16x1xf32>
    %18 = tpu.concatenate %17, %16, %17 in 2 : vector<16x16x1xf32>, vector<16x16x4xf32>, vector<16x16x1xf32> -> vector<16x16x6xf32>
    %19 = vector.extract_strided_slice %18 {offsets = [0, 0, 0], sizes = [16, 16, 4], strides = [1, 1, 1]} : vector<16x16x6xf32> to vector<16x16x4xf32>
    %20 = vector.extract_strided_slice %18 {offsets = [0, 0, 1], sizes = [16, 16, 4], strides = [1, 1, 1]} : vector<16x16x6xf32> to vector<16x16x4xf32>
    %21 = arith.addf %19, %20 : vector<16x16x4xf32>
    %22 = vector.extract_strided_slice %18 {offsets = [0, 0, 2], sizes = [16, 16, 4], strides = [1, 1, 1]} : vector<16x16x6xf32> to vector<16x16x4xf32>
    %23 = arith.addf %21, %22 : vector<16x16x4xf32>
    %cst_5 = arith.constant 0.0370370373 : f32
    %24 = vector.broadcast %cst_5 : f32 to vector<16x16x4xf32>
    %25 = arith.mulf %23, %24 : vector<16x16x4xf32>
    %cst_6 = arith.constant 1.000000e+00 : f32
    %26 = vector.broadcast %cst_6 : f32 to vector<16x16x4xf32>
    %27 = arith.addf %25, %26 : vector<16x16x4xf32>
    %28 = math.rsqrt %27 : vector<16x16x4xf32>
    %29 = math.sqrt %28 : vector<16x16x4xf32>
    %30 = arith.mulf %28, %29 : vector<16x16x4xf32>
    %31 = arith.mulf %1, %30 : vector<16x16x4xf32>
    %c0_7 = arith.constant 0 : index
    %c0_8 = arith.constant 0 : index
    %c0_9 = arith.constant 0 : index
    %c0_10 = arith.constant 0 : index
    %32 = vector.load %arg2[%c0_7, %c0_8, %c0_9, %c0_10] : memref<1x16x16x4xf32, #tpu.memory_space<vmem>>, vector<1x16x16x4xf32>
    %33 = vector.shape_cast %32 : vector<1x16x16x4xf32> to vector<16x16x4xf32>
    %34 = vector.shape_cast %31 : vector<16x16x4xf32> to vector<1x16x16x4xf32>
    tpu.vector_store %arg2[%c0_7, %c0_8, %c0_9, %c0_10], %34 {strides = array<i32>} : memref<1x16x16x4xf32, #tpu.memory_space<vmem>>, vector<1x16x16x4xf32>,
    return
  }
  func.func @transform_0(%arg0: i32) -> (i32, i32, i32, i32) {
    %c0_i32 = arith.constant 0 : i32
    %c0_i32_0 = arith.constant 0 : i32
    %c0_i32_1 = arith.constant 0 : i32
    %c0_i32_2 = arith.constant 0 : i32
    return %arg0, %c0_i32, %c0_i32_0, %c0_i32_1 : i32, i32, i32, i32
  }
  func.func @transform_1(%arg0: i32) -> (i32, i32, i32, i32) {
    %c0_i32 = arith.constant 0 : i32
    %c0_i32_0 = arith.constant 0 : i32
    %c0_i32_1 = arith.constant 0 : i32
    %c0_i32_2 = arith.constant 0 : i32
    return %arg0, %c0_i32, %c0_i32_0, %c0_i32_1 : i32, i32, i32, i32
  }
}

</mosaic_0001>

<bundles_post_ra>
// kernel: tpu_custom_call.1
= control target key start
LH: loop header
LB: loop body
LE: loop exit
PB: predicated region body
PF: predicated region fallthrough
CT: control target
= control target key end

     0   :  { %s1887_s6 = smov 0   ;;  %s2987_s0 = inlined_call_operand.vmem [shape: f32[2,16,16,4], index: 0, kind: input, shape index: {}]   ;;  %s2988_s1 = inlined_call_operand.vmem [shape: f32[2,16,16,4], index: 1, kind: output, shape index: {}]  }
   0x1 LB: > { %s1682_s7 = sadd.s32 4294967295, %s1872_s6   ;;  %p1686_p0 = scmp.ge.s32.totalorder %s1872_s6, 1  ;;  %s1872_s6 = sphi %s1887_s6, %s11_s6  }
   0x2   : > { %p87_p1 = scmp.lt.s32.totalorder %s1872_s6, 3 }
   0x4   : > { %p88_p2 = pnand %p1686_p0, %p87_p1 }
   0x6   : > { %91 = sbr.rel (%p88_p2) target bundleno = 548 (0x224), region = 24 }
   0xd   : > { %p107_p3 = scmp.lt.s32.totalorder %s1682_s7, 1  ;;  %vm213_vm0 = vcmask 1040384   ;;  %vm374_vm1 = vcmask 1046528   ;;  %vm519_vm2 = vcmask 1045504   ;;  %s1874_s12 = smov 1   ;;  %vm856_vm3 = vcmask 7168  }
   0xe   : > { %vm889_vm4 = vcmask 39936   ;;  %s1875_s13 = smov 127   ;;  %s1876_s14 = smov 126   ;;  %vm1594_vm9 = vcmask 31744  }
   0xf   : > { %s3017_s7 = smov (!%p107_p3, %s1682_s7), 1 }
  0x10   : > { %s1693_s8 = sshll.u32 %s3017_s7, 8 }
  0x11   : > { %s1903_s11 = scalar_lea.vmem %s2987_s0, %s1693_s8  ;;  %s2423_s17 = scalar_lea.vmem %s2988_s1, %s1693_s8 }
  0x12   : > { %v117_v0 = vld [vmem:[%s1903_s11] sm:$0xff]  ;;  %v118_v1 = vld [vmem:[%s1903_s11 + $0x8] sm:$0xff]  ;;  %v119_v2 = vld [vmem:[%s1903_s11 + $0x10] sm:$0xff] }
  0x13   : > { %v120_v3 = vld [vmem:[%s1903_s11 + $0x18] sm:$0xff]  ;;  %v121_v4 = vld [vmem:[%s1903_s11 + $0x20] sm:$0xff]  ;;  %v122_v5 = vld [vmem:[%s1903_s11 + $0x28] sm:$0xff]  ;;  %v149_v6 = vmul.f32 %v117_v0, %v117_v0  ;;  %v150_v7 = vmul.f32 %v118_v1, %v118_v1  ;;  %v151_v8 = vmul.f32 %v119_v2, %v119_v2 }
  0x14   : > { %v152_v9 = vmul.f32 %v120_v3, %v120_v3  ;;  %v153_v10 = vmul.f32 %v121_v4, %v121_v4  ;;  %v154_v11 = vmul.f32 %v122_v5, %v122_v5  ;;  %v123_v12 = vld [vmem:[%s1903_s11 + $0x30] sm:$0xff]  ;;  %v124_v13 = vld [vmem:[%s1903_s11 + $0x38] sm:$0xff]  ;;  %v125_v2 = vld [vmem:[%s1903_s11 + $0x40] sm:$0xff] }
  0x15   : > { %v214_v14 = vrot.slane %v149_v6, 7  ;;  %v215_v15 = vrot.slane %v150_v7, 7  ;;  %v217_v16 = vrot.slane %v151_v8, 7  ;;  %v1913_v17 = vmul.f32 %v123_v12, %v123_v12  ;;  %v126_v3 = vld [vmem:[%s1903_s11 + $0x48] sm:$0xff] }
  0x16   : > { %v218_v18 = vrot.slane %v152_v9, 7  ;;  %v220_v19 = vrot.slane %v153_v10, 7  ;;  %v221_v20 = vrot.slane %v154_v11, 7  ;;  %v1915_v21 = vmul.f32 %v124_v13, %v124_v13 }
  0x17   : > { %v216_v22 = vsel %vm213_vm0, %v214_v14, %v215_v15  ;;  %v310_v23 = vsel %vm213_vm0, 0.0, %v214_v14  ;;  %v311_v24 = vsel %vm213_vm0, 0.0, %v217_v16  ;;  %v326_v25 = vsel %vm213_vm0, %v215_v15, 0.0 }
  0x18   : > { %v219_v26 = vsel %vm213_vm0, %v217_v16, %v218_v18  ;;  %v222_v27 = vsel %vm213_vm0, %v220_v19, %v221_v20  ;;  %v312_v28 = vsel %vm213_vm0, 0.0, %v220_v19  ;;  %v375_v29 = vrot.slane %v310_v23, 1 }
  0x19   : > { %v376_v30 = vrot.slane %v216_v22, 1  ;;  %v380_v31 = vrot.slane %v311_v24, 1  ;;  %v381_v32 = vrot.slane %v219_v26, 1  ;;  %v385_v33 = vrot.slane %v312_v28, 1 }
  0x1a   : > { %v386_v34 = vrot.slane %v222_v27, 1  ;;  %v520_v35 = vrot.slane %v310_v23, 2  ;;  %v521_v36 = vrot.slane %v216_v22, 2  ;;  %v525_v37 = vrot.slane %v311_v24, 2 }
  0x1b   : > { %v377_v38 = vsel %vm374_vm1, %v375_v29, %v376_v30  ;;  %v382_v39 = vsel %vm374_vm1, %v380_v31, %v381_v32  ;;  %v526_v40 = vrot.slane %v219_v26, 2  ;;  %v530_v41 = vrot.slane %v312_v28, 2 }
  0x1c   : > { %v387_v42 = vsel %vm374_vm1, %v385_v33, %v386_v34  ;;  %v487_v43 = vadd.f32 %v377_v38, %v310_v23  ;;  %v489_v44 = vadd.f32 %v382_v39, %v311_v24  ;;  %v522_v45 = vsel %vm519_vm2, %v520_v35, %v521_v36 }
  0x1d   : > { %v491_v46 = vadd.f32 %v387_v42, %v312_v28  ;;  %v527_v47 = vsel %vm519_vm2, %v525_v37, %v526_v40  ;;  %v531_v48 = vrot.slane %v222_v27, 2  ;;  %v327_v49 = vsel %vm213_vm0, %v218_v18, 0.0  ;;  %v128_v37 = vld [vmem:[%s1903_s11 + $0x58] sm:$0xff] }
  0x1e   : > { %v632_v50 = vadd.f32 %v522_v45, %v487_v43  ;;  %v634_v51 = vadd.f32 %v527_v47, %v489_v44  ;;  %v378_v52 = vrot.slane %v326_v25, 1  ;;  %v383_v53 = vrot.slane %v327_v49, 1 }
  0x1f   : > { %v532_v54 = vsel %vm519_vm2, %v530_v41, %v531_v48  ;;  %v523_v55 = vrot.slane %v326_v25, 2  ;;  %v528_v56 = vrot.slane %v327_v49, 2  ;;  %v328_v57 = vsel %vm213_vm0, %v221_v20, 0.0 }
  0x20   : > { %v1932_v58 = vadd.f32 %v532_v54, %v491_v46  ;;  %v666_v59 = vadd.f32 %v634_v51, %v632_v50  ;;  %v379_v60 = vsel %vm374_vm1, %v376_v30, %v378_v52  ;;  %v384_v61 = vsel %vm374_vm1, %v381_v32, %v383_v53  ;;  %v129_v54 = vld [vmem:[%s1903_s11 + $0x60] sm:$0xff] }
  0x21   : > { %v488_v62 = vadd.f32 %v379_v60, %v216_v22  ;;  %v490_v63 = vadd.f32 %v384_v61, %v219_v26  ;;  %v524_v0 = vsel %vm519_vm2, %v521_v36, %v523_v55  ;;  %v529_v1 = vsel %vm519_vm2, %v526_v40, %v528_v56  ;;  %v127_v36 = vld [vmem:[%s1903_s11 + $0x50] sm:$0xff] }
  0x22   : > { %v668_v4 = vadd.f32 %v1932_v58, %v634_v51  ;;  %760 = vrot.lane.b32.xlu0 %v666_v59, %s1874_s12  ;;  %v698_v5 = vadd.f32 %v666_v59, %v1932_v58  ;;  %v388_v6 = vrot.slane %v328_v57, 1  ;;  %v533_v7 = vrot.slane %v328_v57, 2 }
  0x23   : > { %v633_v8 = vadd.f32 %v524_v0, %v488_v62  ;;  %v635_v9 = vadd.f32 %v529_v1, %v490_v63  ;;  %v223_v10 = vrot.slane %v1913_v17, 7  ;;  %v224_v11 = vrot.slane %v1915_v21, 7 }
  0x24   : > { %764 = vrot.lane.b32.xlu1 %v698_v5, %s1874_s12  ;;  %v389_v12 = vsel %vm374_vm1, %v386_v34, %v388_v6  ;;  %v534_v13 = vsel %vm519_vm2, %v531_v48, %v533_v7  ;;  %v157_v14 = vmul.f32 %v125_v2, %v125_v2  ;;  %v158_v15 = vmul.f32 %v126_v3, %v126_v3  ;;  %v130_v7 = vld [vmem:[%s1903_s11 + $0x68] sm:$0xff] }
  0x25   : > { %v667_v16 = vadd.f32 %v635_v9, %v633_v8  ;;  %v492_v18 = vadd.f32 %v389_v12, %v222_v27  ;;  %v225_v19 = vsel %vm213_vm0, %v223_v10, %v224_v11  ;;  %v313_v20 = vsel %vm213_vm0, 0.0, %v223_v10 }
  0x26   : > { %v390_v22 = vrot.slane %v313_v20, 1  ;;  %v391_v23 = vrot.slane %v225_v19, 1  ;;  %v535_v17 = vrot.slane %v313_v20, 2  ;;  %v536_v21 = vrot.slane %v225_v19, 2 }
  0x27   : > { %762 = vrot.lane.b32.xlu0 %v667_v16, %s1874_s12  ;;  %v637_v24 = vadd.f32 %v534_v13, %v492_v18  ;;  %v329_v25 = vsel %vm213_vm0, %v224_v11, 0.0  ;;  %v226_v26 = vrot.slane %v157_v14, 7  ;;  %v227_v28 = vrot.slane %v158_v15, 7 }
  0x28   : > { %v392_v29 = vsel %vm374_vm1, %v390_v22, %v391_v23  ;;  %v537_v27 = vsel %vm519_vm2, %v535_v17, %v536_v21  ;;  %v393_v30 = vrot.slane %v329_v25, 1  ;;  %v538_v31 = vrot.slane %v329_v25, 2  ;;  %v131_v22 = vld [vmem:[%s1903_s11 + $0x70] sm:$0xff] }
  0x29   : > { %v699_v32 = vadd.f32 %v667_v16, %v637_v24  ;;  %v493_v33 = vadd.f32 %v392_v29, %v313_v20  ;;  %v669_v34 = vadd.f32 %v637_v24, %v635_v9  ;;  %v228_v35 = vsel %vm213_vm0, %v226_v26, %v227_v28 }
  0x2a   : > { %v394_v38 = vsel %vm374_vm1, %v391_v23, %v393_v30  ;;  %v539_v39 = vsel %vm519_vm2, %v536_v21, %v538_v31  ;;  %v314_v40 = vsel %vm213_vm0, 0.0, %v226_v26  ;;  %v396_v41 = vrot.slane %v228_v35, 1  ;;  %v132_v23 = vld [vmem:[%s1903_s11 + $0x78] sm:$0xff] }
  0x2b   : > { %766 = vrot.lane.b32.xlu1 %v699_v32, %s1874_s12  ;;  %v638_v42 = vadd.f32 %v537_v27, %v493_v33  ;;  %v494_v43 = vadd.f32 %v394_v38, %v225_v19  ;;  %v395_v44 = vrot.slane %v314_v40, 1  ;;  %v540_v45 = vrot.slane %v314_v40, 2 }
  0x2c   : > { %v541_v46 = vrot.slane %v228_v35, 2  ;;  %v330_v47 = vsel %vm213_vm0, %v227_v28, 0.0  ;;  %v159_v48 = vmul.f32 %v127_v36, %v127_v36  ;;  %v160_v49 = vmul.f32 %v128_v37, %v128_v37 }
  0x2d   : > { %v700_v50 = vadd.f32 %v668_v4, %v638_v42  ;;  %v639_v51 = vadd.f32 %v539_v39, %v494_v43  ;;  %v397_v52 = vsel %vm374_vm1, %v395_v44, %v396_v41  ;;  %v670_v53 = vadd.f32 %v638_v42, %v1932_v58 }
  0x2e   : > { %v495_v55 = vadd.f32 %v397_v52, %v314_v40  ;;  %v542_v56 = vsel %vm519_vm2, %v540_v45, %v541_v46  ;;  %v398_v57 = vrot.slane %v330_v47, 1  ;;  %v543_v59 = vrot.slane %v330_v47, 2 }
  0x2f   : > { %768 = vrot.lane.b32.xlu0 %v700_v50, %s1874_s12  ;;  %v701_v60 = vadd.f32 %v669_v34, %v639_v51  ;;  %v671_v61 = vadd.f32 %v639_v51, %v637_v24  ;;  %v229_v62 = vrot.slane %v159_v48, 7  ;;  %v230_v63 = vrot.slane %v160_v49, 7 }
  0x30   : > { %v640_v0 = vadd.f32 %v542_v56, %v495_v55  ;;  %v399_v1 = vsel %vm374_vm1, %v396_v41, %v398_v57  ;;  %v544_v2 = vsel %vm519_vm2, %v541_v46, %v543_v59  ;;  %v161_v3 = vmul.f32 %v129_v54, %v129_v54 }
  0x31   : > { %770 = vrot.lane.b32.xlu1 %v701_v60, %s1874_s12  ;;  %v496_v58 = vadd.f32 %v399_v1, %v228_v35  ;;  %v231_v4 = vsel %vm213_vm0, %v229_v62, %v230_v63  ;;  %v315_v5 = vsel %vm213_vm0, 0.0, %v229_v62  ;;  %v331_v6 = vsel %vm213_vm0, %v230_v63, 0.0  ;;  %v134_v60 = vld [vmem:[%s1903_s11 + $0x88] sm:$0xff] }
  0x32   : > { %v702_v8 = vadd.f32 %v670_v53, %v640_v0  ;;  %v400_v9 = vrot.slane %v315_v5, 1  ;;  %v401_v10 = vrot.slane %v231_v4, 1  ;;  %v545_v11 = vrot.slane %v315_v5, 2 }
  0x33   : > { %v641_v12 = vadd.f32 %v544_v2, %v496_v58  ;;  %v546_v13 = vrot.slane %v231_v4, 2  ;;  %v672_v14 = vadd.f32 %v640_v0, %v638_v42  ;;  %v403_v15 = vrot.slane %v331_v6, 1  ;;  %v133_v42 = vld [vmem:[%s1903_s11 + $0x80] sm:$0xff] }
  0x34   : > { %772 = vrot.lane.b32.xlu0 %v702_v8, %s1874_s12  ;;  %v402_v16 = vsel %vm374_vm1, %v400_v9, %v401_v10  ;;  %v548_v18 = vrot.slane %v331_v6, 2  ;;  %v162_v19 = vmul.f32 %v130_v7, %v130_v7  ;;  %v232_v20 = vrot.slane %v161_v3, 7  ;;  %v135_v8 = vld [vmem:[%s1903_s11 + $0x90] sm:$0xff]  ;;  %v136_v9 = vld [vmem:[%s1903_s11 + $0x98] sm:$0xff] }
  0x35   : > { %v703_v17 = vadd.f32 %v671_v61, %v641_v12  ;;  %v497_v21 = vadd.f32 %v402_v16, %v315_v5  ;;  %v547_v24 = vsel %vm519_vm2, %v545_v11, %v546_v13  ;;  %v404_v25 = vsel %vm374_vm1, %v401_v10, %v403_v15  ;;  %v138_v15 = vld [vmem:[%s1903_s11 + $0xa8] sm:$0xff] }
  0x36   : > { %v498_v26 = vadd.f32 %v404_v25, %v231_v4  ;;  %v549_v28 = vsel %vm519_vm2, %v546_v13, %v548_v18  ;;  %v673_v29 = vadd.f32 %v641_v12, %v639_v51  ;;  %v233_v27 = vrot.slane %v162_v19, 7 }
  0x37   : > { %774 = vrot.lane.b32.xlu1 %v703_v17, %s1874_s12  ;;  %v642_v30 = vadd.f32 %v547_v24, %v497_v21  ;;  %v316_v31 = vsel %vm213_vm0, 0.0, %v232_v20  ;;  %v163_v32 = vmul.f32 %v131_v22, %v131_v22  ;;  %v164_v33 = vmul.f32 %v132_v23, %v132_v23 }
  0x38   : > { %v643_v34 = vadd.f32 %v549_v28, %v498_v26  ;;  %v234_v35 = vsel %vm213_vm0, %v232_v20, %v233_v27  ;;  %v405_v36 = vrot.slane %v316_v31, 1  ;;  %v550_v37 = vrot.slane %v316_v31, 2 }
  0x39   : > { %v704_v38 = vadd.f32 %v672_v14, %v642_v30  ;;  %v406_v39 = vrot.slane %v234_v35, 1  ;;  %v551_v40 = vrot.slane %v234_v35, 2  ;;  %v674_v41 = vadd.f32 %v642_v30, %v640_v0  ;;  %v137_v14 = vld [vmem:[%s1903_s11 + $0xa0] sm:$0xff] }
  0x3a   : > { %v705_v43 = vadd.f32 %v673_v29, %v643_v34  ;;  %v332_v44 = vsel %vm213_vm0, %v233_v27, 0.0  ;;  %v675_v45 = vadd.f32 %v643_v34, %v641_v12  ;;  %v235_v46 = vrot.slane %v163_v32, 7 }
  0x3b   : > { %776 = vrot.lane.b32.xlu0 %v704_v38, %s1874_s12  ;;  %v407_v47 = vsel %vm374_vm1, %v405_v36, %v406_v39  ;;  %v552_v48 = vsel %vm519_vm2, %v550_v37, %v551_v40  ;;  %v408_v49 = vrot.slane %v332_v44, 1  ;;  %v553_v50 = vrot.slane %v332_v44, 2 }
  0x3c   : > { %778 = vrot.lane.b32.xlu1 %v705_v43, %s1874_s12  ;;  %v499_v51 = vadd.f32 %v407_v47, %v316_v31  ;;  %v236_v52 = vrot.slane %v164_v33, 7  ;;  %v317_v53 = vsel %vm213_vm0, 0.0, %v235_v46  ;;  %v165_v54 = vmul.f32 %v133_v42, %v133_v42 }
  0x3d   : > { %v409_v55 = vsel %vm374_vm1, %v406_v39, %v408_v49  ;;  %v554_v56 = vsel %vm519_vm2, %v551_v40, %v553_v50  ;;  %v410_v57 = vrot.slane %v317_v53, 1  ;;  %v555_v59 = vrot.slane %v317_v53, 2 }
  0x3e   : > { %v644_v61 = vadd.f32 %v552_v48, %v499_v51  ;;  %v500_v62 = vadd.f32 %v409_v55, %v234_v35  ;;  %v237_v63 = vsel %vm213_vm0, %v235_v46, %v236_v52  ;;  %v333_v0 = vsel %vm213_vm0, %v236_v52, 0.0 }
  0x3f   : > { %v411_v1 = vrot.slane %v237_v63, 1  ;;  %v556_v2 = vrot.slane %v237_v63, 2  ;;  %v413_v3 = vrot.slane %v333_v0, 1  ;;  %v558_v58 = vrot.slane %v333_v0, 2 }
  0x40   : > { %v706_v4 = vadd.f32 %v674_v41, %v644_v61  ;;  %v645_v5 = vadd.f32 %v554_v56, %v500_v62  ;;  %v676_v6 = vadd.f32 %v644_v61, %v642_v30  ;;  %v166_v7 = vmul.f32 %v134_v60, %v134_v60 }
  0x41   : > { %v412_v10 = vsel %vm374_vm1, %v410_v57, %v411_v1  ;;  %v557_v11 = vsel %vm519_vm2, %v555_v59, %v556_v2  ;;  %v414_v12 = vsel %vm374_vm1, %v411_v1, %v413_v3  ;;  %v559_v13 = vsel %vm519_vm2, %v556_v2, %v558_v58 }
  0x42   : > { %780 = vrot.lane.b32.xlu0 %v706_v4, %s1874_s12  ;;  %v707_v16 = vadd.f32 %v675_v45, %v645_v5  ;;  %v501_v18 = vadd.f32 %v412_v10, %v317_v53  ;;  %v502_v19 = vadd.f32 %v414_v12, %v237_v63  ;;  %v677_v20 = vadd.f32 %v645_v5, %v643_v34  ;;  %v139_v12 = vld [vmem:[%s1903_s11 + $0xb0] sm:$0xff] }
  0x43   : > { %v238_v22 = vrot.slane %v165_v54, 7  ;;  %v239_v23 = vrot.slane %v166_v7, 7  ;;  %v167_v17 = vmul.f32 %v135_v8, %v135_v8  ;;  %v168_v21 = vmul.f32 %v136_v9, %v136_v9 }
  0x44   : > { %782 = vrot.lane.b32.xlu1 %v707_v16, %s1874_s12  ;;  %v646_v24 = vadd.f32 %v557_v11, %v501_v18  ;;  %v647_v25 = vadd.f32 %v559_v13, %v502_v19  ;;  %v169_v26 = vmul.f32 %v137_v14, %v137_v14  ;;  %v170_v28 = vmul.f32 %v138_v15, %v138_v15  ;;  %v140_v18 = vld [vmem:[%s1903_s11 + $0xb8] sm:$0xff] }
  0x45   : > { %v240_v29 = vsel %vm213_vm0, %v238_v22, %v239_v23  ;;  %v318_v27 = vsel %vm213_vm0, 0.0, %v238_v22  ;;  %v334_v30 = vsel %vm213_vm0, %v239_v23, 0.0  ;;  %v241_v31 = vrot.slane %v167_v17, 7 }
  0x46   : > { %v708_v32 = vadd.f32 %v676_v6, %v646_v24  ;;  %v709_v33 = vadd.f32 %v677_v20, %v647_v25  ;;  %v415_v34 = vrot.slane %v318_v27, 1  ;;  %v416_v35 = vrot.slane %v240_v29, 1 }
  0x47   : > { %v560_v36 = vrot.slane %v318_v27, 2  ;;  %v561_v37 = vrot.slane %v240_v29, 2  ;;  %v678_v38 = vadd.f32 %v646_v24, %v644_v61  ;;  %v418_v39 = vrot.slane %v334_v30, 1 }
  0x48   : > { %784 = vrot.lane.b32.xlu0 %v708_v32, %s1874_s12  ;;  %786 = vrot.lane.b32.xlu1 %v709_v33, %s1874_s12  ;;  %v417_v40 = vsel %vm374_vm1, %v415_v34, %v416_v35  ;;  %v563_v41 = vrot.slane %v334_v30, 2  ;;  %v679_v42 = vadd.f32 %v647_v25, %v645_v5  ;;  %v242_v43 = vrot.slane %v168_v21, 7  ;;  %v143_v32 = vld [vmem:[%s1903_s11 + $0xd0] sm:$0xff]  ;;  %v144_v33 = vld [vmem:[%s1903_s11 + $0xd8] sm:$0xff] }
  0x49   : > { %v503_v44 = vadd.f32 %v417_v40, %v318_v27  ;;  %v562_v45 = vsel %vm519_vm2, %v560_v36, %v561_v37  ;;  %v419_v46 = vsel %vm374_vm1, %v416_v35, %v418_v39  ;;  %v319_v47 = vsel %vm213_vm0, 0.0, %v241_v31 }
  0x4a   : > { %v504_v48 = vadd.f32 %v419_v46, %v240_v29  ;;  %v564_v49 = vsel %vm519_vm2, %v561_v37, %v563_v41  ;;  %v243_v50 = vsel %vm213_vm0, %v241_v31, %v242_v43  ;;  %v420_v51 = vrot.slane %v319_v47, 1 }
  0x4b   : > { %v648_v52 = vadd.f32 %v562_v45, %v503_v44  ;;  %v421_v53 = vrot.slane %v243_v50, 1  ;;  %v565_v54 = vrot.slane %v319_v47, 2  ;;  %v566_v55 = vrot.slane %v243_v50, 2 }
  0x4c   : > { %v649_v56 = vadd.f32 %v564_v49, %v504_v48  ;;  %v335_v57 = vsel %vm213_vm0, %v242_v43, 0.0  ;;  %v244_v59 = vrot.slane %v169_v26, 7  ;;  %v245_v60 = vrot.slane %v170_v28, 7  ;;  %v141_v26 = vld [vmem:[%s1903_s11 + $0xc0] sm:$0xff]  ;;  %v142_v28 = vld [vmem:[%s1903_s11 + $0xc8] sm:$0xff] }
  0x4d   : > { %v710_v61 = vadd.f32 %v678_v38, %v648_v52  ;;  %v422_v62 = vsel %vm374_vm1, %v420_v51, %v421_v53  ;;  %v567_v63 = vsel %vm519_vm2, %v565_v54, %v566_v55  ;;  %v680_v0 = vadd.f32 %v648_v52, %v646_v24 }
  0x4e   : > { %v711_v1 = vadd.f32 %v679_v42, %v649_v56  ;;  %v505_v2 = vadd.f32 %v422_v62, %v319_v47  ;;  %v423_v3 = vrot.slane %v335_v57, 1  ;;  %v568_v58 = vrot.slane %v335_v57, 2 }
  0x4f   : > { %788 = vrot.lane.b32.xlu0 %v710_v61, %s1874_s12  ;;  %v681_v4 = vadd.f32 %v649_v56, %v647_v25  ;;  %v246_v5 = vsel %vm213_vm0, %v244_v59, %v245_v60  ;;  %v320_v6 = vsel %vm213_vm0, 0.0, %v244_v59  ;;  %v336_v7 = vsel %vm213_vm0, %v245_v60, 0.0 }
  0x50   : > { %790 = vrot.lane.b32.xlu1 %v711_v1, %s1874_s12  ;;  %v650_v8 = vadd.f32 %v567_v63, %v505_v2  ;;  %v424_v9 = vsel %vm374_vm1, %v421_v53, %v423_v3  ;;  %v569_v10 = vsel %vm519_vm2, %v566_v55, %v568_v58  ;;  %v425_v11 = vrot.slane %v320_v6, 1 }
  0x51   : > { %v506_v13 = vadd.f32 %v424_v9, %v243_v50  ;;  %v426_v14 = vrot.slane %v246_v5, 1  ;;  %v570_v15 = vrot.slane %v320_v6, 2  ;;  %v571_v16 = vrot.slane %v246_v5, 2 }
  0x52   : > { %v712_v19 = vadd.f32 %v680_v0, %v650_v8  ;;  %v682_v20 = vadd.f32 %v650_v8, %v648_v52  ;;  %v428_v22 = vrot.slane %v336_v7, 1  ;;  %v573_v23 = vrot.slane %v336_v7, 2 }
  0x53   : > { %v651_v17 = vadd.f32 %v569_v10, %v506_v13  ;;  %v427_v21 = vsel %vm374_vm1, %v425_v11, %v426_v14  ;;  %v572_v24 = vsel %vm519_vm2, %v570_v15, %v571_v16  ;;  %v171_v25 = vmul.f32 %v139_v12, %v139_v12 }
  0x54   : > { %792 = vrot.lane.b32.xlu0 %v712_v19, %s1874_s12  ;;  %v507_v29 = vadd.f32 %v427_v21, %v320_v6  ;;  %v429_v27 = vsel %vm374_vm1, %v426_v14, %v428_v22  ;;  %v574_v30 = vsel %vm519_vm2, %v571_v16, %v573_v23  ;;  %v172_v31 = vmul.f32 %v140_v18, %v140_v18  ;;  %v145_v19 = vld [vmem:[%s1903_s11 + $0xe0] sm:$0xff] }
  0x55   : > { %v713_v34 = vadd.f32 %v681_v4, %v651_v17  ;;  %v508_v35 = vadd.f32 %v429_v27, %v246_v5  ;;  %v683_v36 = vadd.f32 %v651_v17, %v649_v56  ;;  %v247_v37 = vrot.slane %v171_v25, 7 }
  0x56   : > { %v652_v38 = vadd.f32 %v572_v24, %v507_v29  ;;  %v248_v39 = vrot.slane %v172_v31, 7  ;;  %v173_v40 = vmul.f32 %v141_v26, %v141_v26  ;;  %v174_v41 = vmul.f32 %v142_v28, %v142_v28 }
  0x57   : > { %794 = vrot.lane.b32.xlu1 %v713_v34, %s1874_s12  ;;  %v653_v42 = vadd.f32 %v574_v30, %v508_v35  ;;  %v321_v43 = vsel %vm213_vm0, 0.0, %v247_v37  ;;  %v175_v44 = vmul.f32 %v143_v32, %v143_v32  ;;  %v176_v45 = vmul.f32 %v144_v33, %v144_v33  ;;  %v146_v35 = vld [vmem:[%s1903_s11 + $0xe8] sm:$0xff] }
  0x58   : > { %v714_v46 = vadd.f32 %v682_v20, %v652_v38  ;;  %v249_v47 = vsel %vm213_vm0, %v247_v37, %v248_v39  ;;  %v430_v48 = vrot.slane %v321_v43, 1  ;;  %v575_v49 = vrot.slane %v321_v43, 2 }
  0x59   : > { %v715_v50 = vadd.f32 %v683_v36, %v653_v42  ;;  %v431_v51 = vrot.slane %v249_v47, 1  ;;  %v576_v52 = vrot.slane %v249_v47, 2  ;;  %v684_v53 = vadd.f32 %v652_v38, %v650_v8 }
  0x5a   : > { %796 = vrot.lane.b32.xlu0 %v714_v46, %s1874_s12  ;;  %v337_v54 = vsel %vm213_vm0, %v248_v39, 0.0  ;;  %v685_v55 = vadd.f32 %v653_v42, %v651_v17  ;;  %v250_v56 = vrot.slane %v173_v40, 7  ;;  %v251_v57 = vrot.slane %v174_v41, 7  ;;  %v147_v40 = vld [vmem:[%s1903_s11 + $0xf0] sm:$0xff] }
  0x5b   : > { %798 = vrot.lane.b32.xlu1 %v715_v50, %s1874_s12  ;;  %v432_v59 = vsel %vm374_vm1, %v430_v48, %v431_v51  ;;  %v577_v60 = vsel %vm519_vm2, %v575_v49, %v576_v52  ;;  %v433_v61 = vrot.slane %v337_v54, 1  ;;  %v578_v62 = vrot.slane %v337_v54, 2 }
  0x5c   : > { %v509_v63 = vadd.f32 %v432_v59, %v321_v43  ;;  %v252_v0 = vsel %vm213_vm0, %v250_v56, %v251_v57  ;;  %v322_v1 = vsel %vm213_vm0, 0.0, %v250_v56  ;;  %v338_v2 = vsel %vm213_vm0, %v251_v57, 0.0 }
  0x5d   : > { %v434_v3 = vsel %vm374_vm1, %v431_v51, %v433_v61  ;;  %v579_v58 = vsel %vm519_vm2, %v576_v52, %v578_v62  ;;  %v435_v4 = vrot.slane %v322_v1, 1  ;;  %v436_v5 = vrot.slane %v252_v0, 1 }
  0x5e   : > { %v654_v6 = vadd.f32 %v577_v60, %v509_v63  ;;  %v510_v7 = vadd.f32 %v434_v3, %v249_v47  ;;  %v580_v8 = vrot.slane %v322_v1, 2  ;;  %v581_v9 = vrot.slane %v252_v0, 2 }
  0x5f   : > { %v437_v10 = vsel %vm374_vm1, %v435_v4, %v436_v5  ;;  %v438_v11 = vrot.slane %v338_v2, 1  ;;  %v583_v12 = vrot.slane %v338_v2, 2  ;;  %v253_v13 = vrot.slane %v175_v44, 7 }
  0x60   : > { %v716_v14 = vadd.f32 %v684_v53, %v654_v6  ;;  %v655_v15 = vadd.f32 %v579_v58, %v510_v7  ;;  %v511_v16 = vadd.f32 %v437_v10, %v322_v1  ;;  %v582_v18 = vsel %vm519_vm2, %v580_v8, %v581_v9 }
  0x61   : > { %v686_v20 = vadd.f32 %v654_v6, %v652_v38  ;;  %v439_v22 = vsel %vm374_vm1, %v436_v5, %v438_v11  ;;  %v584_v23 = vsel %vm519_vm2, %v581_v9, %v583_v12  ;;  %v254_v17 = vrot.slane %v176_v45, 7  ;;  %v148_v45 = vld [vmem:[%s1903_s11 + $0xf8] sm:$0xff] }
  0x62   : > { %800 = vrot.lane.b32.xlu0 %v716_v14, %s1874_s12  ;;  %v717_v21 = vadd.f32 %v685_v55, %v655_v15  ;;  %v656_v24 = vadd.f32 %v582_v18, %v511_v16  ;;  %v512_v25 = vadd.f32 %v439_v22, %v252_v0  ;;  %v687_v26 = vadd.f32 %v655_v15, %v653_v42 }
  0x63   : > { %v255_v28 = vsel %vm213_vm0, %v253_v13, %v254_v17  ;;  %v323_v29 = vsel %vm213_vm0, 0.0, %v253_v13  ;;  %v339_v27 = vsel %vm213_vm0, %v254_v17, 0.0  ;;  %v177_v30 = vmul.f32 %v145_v19, %v145_v19 }
  0x64   : > { %802 = vrot.lane.b32.xlu1 %v717_v21, %s1874_s12  ;;  %v718_v31 = vadd.f32 %v686_v20, %v656_v24  ;;  %v657_v32 = vadd.f32 %v584_v23, %v512_v25  ;;  %v440_v33 = vrot.slane %v323_v29, 1  ;;  %v441_v34 = vrot.slane %v255_v28, 1 }
  0x65   : > { %v585_v36 = vrot.slane %v323_v29, 2  ;;  %v586_v37 = vrot.slane %v255_v28, 2  ;;  %v688_v38 = vadd.f32 %v656_v24, %v654_v6  ;;  %v443_v39 = vrot.slane %v339_v27, 1 }
  0x66   : > { %804 = vrot.lane.b32.xlu0 %v718_v31, %s1874_s12  ;;  %v719_v41 = vadd.f32 %v687_v26, %v657_v32  ;;  %v442_v42 = vsel %vm374_vm1, %v440_v33, %v441_v34  ;;  %v588_v43 = vrot.slane %v339_v27, 2  ;;  %v689_v44 = vadd.f32 %v657_v32, %v655_v15 }
  0x67   : > { %v513_v46 = vadd.f32 %v442_v42, %v323_v29  ;;  %v587_v47 = vsel %vm519_vm2, %v585_v36, %v586_v37  ;;  %v444_v48 = vsel %vm374_vm1, %v441_v34, %v443_v39  ;;  %v178_v49 = vmul.f32 %v146_v35, %v146_v35 }
  0x68   : > { %806 = vrot.lane.b32.xlu1 %v719_v41, %s1874_s12  ;;  %v514_v50 = vadd.f32 %v444_v48, %v255_v28  ;;  %v589_v51 = vsel %vm519_vm2, %v586_v37, %v588_v43  ;;  %v256_v52 = vrot.slane %v177_v30, 7  ;;  %v179_v53 = vmul.f32 %v147_v40, %v147_v40 }
  0x69   : > { %v658_v54 = vadd.f32 %v587_v47, %v513_v46  ;;  %v257_v55 = vrot.slane %v178_v49, 7  ;;  %v180_v56 = vmul.f32 %v148_v45, %v148_v45 }
  0x6a   : > { %v659_v57 = vadd.f32 %v589_v51, %v514_v50  ;;  %v324_v59 = vsel %vm213_vm0, 0.0, %v256_v52  ;;  %v259_v60 = vrot.slane %v179_v53, 7 }
  0x6b   : > { %v720_v61 = vadd.f32 %v688_v38, %v658_v54  ;;  %v258_v62 = vsel %vm213_vm0, %v256_v52, %v257_v55  ;;  %v445_v63 = vrot.slane %v324_v59, 1  ;;  %v590_v0 = vrot.slane %v324_v59, 2 }
  0x6c   : > { %v721_v1 = vadd.f32 %v689_v44, %v659_v57  ;;  %v446_v2 = vrot.slane %v258_v62, 1  ;;  %v591_v3 = vrot.slane %v258_v62, 2  ;;  %v690_v58 = vadd.f32 %v658_v54, %v656_v24 }
  0x6d   : > { %808 = vrot.lane.b32.xlu0 %v720_v61, %s1874_s12  ;;  %v340_v4 = vsel %vm213_vm0, %v257_v55, 0.0  ;;  %v260_v5 = vrot.slane %v180_v56, 7  ;;  %v325_v6 = vsel %vm213_vm0, 0.0, %v259_v60  ;;  %v691_v23 = vadd.f32 %v659_v57, %v657_v32 }
  0x6e   : > { %810 = vrot.lane.b32.xlu1 %v721_v1, %s1874_s12  ;;  %v447_v7 = vsel %vm374_vm1, %v445_v63, %v446_v2  ;;  %v592_v8 = vsel %vm519_vm2, %v590_v0, %v591_v3  ;;  %v448_v9 = vrot.slane %v340_v4, 1  ;;  %v593_v10 = vrot.slane %v340_v4, 2 }
  0x6f   : > { %v515_v11 = vadd.f32 %v447_v7, %v324_v59  ;;  %v261_v12 = vsel %vm213_vm0, %v259_v60, %v260_v5  ;;  %v450_v13 = vrot.slane %v325_v6, 1  ;;  %v595_v14 = vrot.slane %v325_v6, 2 }
  0x70   : > { %v449_v15 = vsel %vm374_vm1, %v446_v2, %v448_v9  ;;  %v594_v16 = vsel %vm519_vm2, %v591_v3, %v593_v10  ;;  %v451_v18 = vrot.slane %v261_v12, 1  ;;  %v596_v19 = vrot.slane %v261_v12, 2 }
  0x71   : > { %v660_v20 = vadd.f32 %v592_v8, %v515_v11  ;;  %v516_v22 = vadd.f32 %v449_v15, %v258_v62  ;;  %v341_v17 = vsel %vm213_vm0, %v260_v5, 0.0 }
  0x72   : > { %v452_v21 = vsel %vm374_vm1, %v450_v13, %v451_v18  ;;  %v597_v24 = vsel %vm519_vm2, %v595_v14, %v596_v19  ;;  %v453_v25 = vrot.slane %v341_v17, 1  ;;  %v598_v26 = vrot.slane %v341_v17, 2 }
  0x73   : > { %v722_v28 = vadd.f32 %v690_v58, %v660_v20  ;;  %v661_v29 = vadd.f32 %v594_v16, %v516_v22  ;;  %v517_v27 = vadd.f32 %v452_v21, %v325_v6  ;;  %v692_v30 = vadd.f32 %v660_v20, %v658_v54 }
  0x74   : > { %v454_v31 = vsel %vm374_vm1, %v451_v18, %v453_v25  ;;  %v599_v33 = vsel %vm519_vm2, %v596_v19, %v598_v26 }
  0x75   : > { %812 = vrot.lane.b32.xlu0 %v722_v28, %s1874_s12  ;;  %v723_v34 = vadd.f32 %v691_v23, %v661_v29  ;;  %v662_v32 = vadd.f32 %v597_v24, %v517_v27  ;;  %v518_v35 = vadd.f32 %v454_v31, %v261_v12  ;;  %v693_v36 = vadd.f32 %v661_v29, %v659_v57 }
  0x77   : > { %814 = vrot.lane.b32.xlu1 %v723_v34, %s1874_s12  ;;  %v724_v37 = vadd.f32 %v692_v30, %v662_v32  ;;  %v663_v38 = vadd.f32 %v599_v33, %v518_v35  ;;  %v694_v40 = vadd.f32 %v662_v32, %v660_v20 }
  0x79   : > { %816 = vrot.lane.b32.xlu0 %v724_v37, %s1874_s12  ;;  %v725_v39 = vadd.f32 %v693_v36, %v663_v38  ;;  %v695_v41 = vadd.f32 %v663_v38, %v661_v29 }
  0x7b   : > { %818 = vrot.lane.b32.xlu1 %v725_v39, %s1874_s12 }
  0x7d   : > { %820 = vrot.lane.b32.xlu0 %v694_v40, %s1874_s12 }
  0x7f   : > { %822 = vrot.lane.b32.xlu1 %v695_v41, %s1874_s12 }
  0x94   : > { %v761_v42 = vpop.permute.xlu0 %760 }
  0x95   : > { %v857_v43 = vsel %vm856_vm3, 0.0, %v761_v42 }
  0x96   : > { %v2094_v44 = vsel %vm889_vm4, %v857_v43, 0.0  ;;  %v765_v47 = vpop.permute.xlu1 %764 }
  0x97   : > { %954 = vrot.lane.b32.xlu0 %v2094_v44, %s1875_s13  ;;  %v859_v19 = vsel %vm856_vm3, 0.0, %v765_v47 }
  0x98   : > { %v2151_v22 = vsel %vm889_vm4, %v859_v19, 0.0 }
  0x99   : > { %v763_v45 = vpop.permute.xlu0 %762 }
  0x9a   : > { %v858_v46 = vsel %vm856_vm3, 0.0, %v763_v45 }
  0x9b   : > { %v2100_v48 = vsel %vm889_vm4, %v858_v46, 0.0 }
  0x9c   : > { %956 = vrot.lane.b32.xlu1 %v2100_v48, %s1875_s13 }
  0x9d   : > { %v767_v49 = vpop.permute.xlu1 %766 }
  0x9e   : > { %v860_v20 = vsel %vm856_vm3, 0.0, %v767_v49 }
  0x9f   : > { %v2157_v17 = vsel %vm889_vm4, %v860_v20, 0.0 }
  0xa1   : > { %v769_v50 = vpop.permute.xlu0 %768 }
  0xa2   : > { %v861_v23 = vsel %vm856_vm3, 0.0, %v769_v50 }
  0xa3   : > { %v771_v51 = vpop.permute.xlu1 %770  ;;  %v2163_v24 = vsel %vm889_vm4, %v861_v23, 0.0 }
  0xa4   : > { %v862_v21 = vsel %vm856_vm3, 0.0, %v771_v51 }
  0xa5   : > { %v2169_v26 = vsel %vm889_vm4, %v862_v21, 0.0 }
  0xa6   : > { %v773_v52 = vpop.permute.xlu0 %772 }
  0xa7   : > { %v863_v25 = vsel %vm856_vm3, 0.0, %v773_v52 }
  0xa8   : > { %v2175_v29 = vsel %vm889_vm4, %v863_v25, 0.0 }
  0xa9   : > { %v775_v53 = vpop.permute.xlu1 %774 }
  0xaa   : > { %v864_v28 = vsel %vm856_vm3, 0.0, %v775_v53 }
  0xab   : > { %v2181_v30 = vsel %vm889_vm4, %v864_v28, 0.0 }
  0xad   : > { %v777_v54 = vpop.permute.xlu0 %776 }
  0xae   : > { %v779_v55 = vpop.permute.xlu1 %778  ;;  %v865_v27 = vsel %vm856_vm3, 0.0, %v777_v54 }
  0xaf   : > { %v866_v31 = vsel %vm856_vm3, 0.0, %v779_v55  ;;  %v2187_v33 = vsel %vm889_vm4, %v865_v27, 0.0 }
  0xb0   : > { %v2193_v32 = vsel %vm889_vm4, %v866_v31, 0.0 }
  0xb4   : > { %v781_v56 = vpop.permute.xlu0 %780 }
  0xb5   : > { %v867_v34 = vsel %vm856_vm3, 0.0, %v781_v56 }
  0xb6   : > { %v783_v57 = vpop.permute.xlu1 %782  ;;  %v2199_v36 = vsel %vm889_vm4, %v867_v34, 0.0 }
  0xb7   : > { %v868_v35 = vsel %vm856_vm3, 0.0, %v783_v57 }
  0xb8   : > { %v2205_v38 = vsel %vm889_vm4, %v868_v35, 0.0 }
  0xba   : > { %v785_v59 = vpop.permute.xlu0 %784  ;;  %v787_v60 = vpop.permute.xlu1 %786 }
  0xbb   : > { %v869_v37 = vsel %vm856_vm3, 0.0, %v785_v59  ;;  %v870_v39 = vsel %vm856_vm3, 0.0, %v787_v60 }
  0xbc   : > { %v2211_v40 = vsel %vm889_vm4, %v869_v37, 0.0  ;;  %v2217_v42 = vsel %vm889_vm4, %v870_v39, 0.0 }
  0xc1   : > { %v789_v61 = vpop.permute.xlu0 %788 }
  0xc2   : > { %v791_v62 = vpop.permute.xlu1 %790  ;;  %v871_v41 = vsel %vm856_vm3, 0.0, %v789_v61 }
  0xc3   : > { %v872_v43 = vsel %vm856_vm3, 0.0, %v791_v62  ;;  %v2223_v45 = vsel %vm889_vm4, %v871_v41, 0.0 }
  0xc4   : > { %v2230_v47 = vsel %vm889_vm4, %v872_v43, 0.0 }
  0xc6   : > { %v2104_v63 = vpop.permute.xlu0 %792 }
  0xc7   : > { %v873_v46 = vsel %vm856_vm3, 0.0, %v2104_v63 }
  0xc8   : > { %v2237_v50 = vsel %vm889_vm4, %v873_v46, 0.0 }
  0xc9   : > { %v2106_v0 = vpop.permute.xlu1 %794 }
  0xca   : > { %v874_v49 = vsel %vm856_vm3, 0.0, %v2106_v0 }
  0xcb   : > { %v2244_v52 = vsel %vm889_vm4, %v874_v49, 0.0 }
  0xcc   : > { %v2108_v1 = vpop.permute.xlu0 %796 }
  0xcd   : > { %v2110_v2 = vpop.permute.xlu1 %798  ;;  %v875_v51 = vsel %vm856_vm3, 0.0, %v2108_v1 }
  0xce   : > { %v876_v53 = vsel %vm856_vm3, 0.0, %v2110_v2  ;;  %v2251_v54 = vsel %vm889_vm4, %v875_v51, 0.0 }
  0xcf   : > { %v2258_v56 = vsel %vm889_vm4, %v876_v53, 0.0 }
  0xd4   : > { %v2112_v3 = vpop.permute.xlu0 %800 }
  0xd5   : > { %v877_v55 = vsel %vm856_vm3, 0.0, %v2112_v3 }
  0xd6   : > { %v2114_v58 = vpop.permute.xlu1 %802  ;;  %v2265_v59 = vsel %vm889_vm4, %v877_v55, 0.0 }
  0xd7   : > { %v878_v57 = vsel %vm856_vm3, 0.0, %v2114_v58 }
  0xd8   : > { %v2116_v4 = vpop.permute.xlu0 %804  ;;  %v2272_v61 = vsel %vm889_vm4, %v878_v57, 0.0 }
  0xd9   : > { %v879_v60 = vsel %vm856_vm3, 0.0, %v2116_v4 }
  0xda   : > { %v2118_v5 = vpop.permute.xlu1 %806  ;;  %v2279_v63 = vsel %vm889_vm4, %v879_v60, 0.0 }
  0xdb   : > { %v880_v62 = vsel %vm856_vm3, 0.0, %v2118_v5 }
  0xdc   : > { %v2286_v1 = vsel %vm889_vm4, %v880_v62, 0.0 }
  0xdf   : > { %v2120_v6 = vpop.permute.xlu0 %808 }
  0xe0   : > { %v2122_v7 = vpop.permute.xlu1 %810  ;;  %v881_v0 = vsel %vm856_vm3, 0.0, %v2120_v6 }
  0xe1   : > { %v882_v2 = vsel %vm856_vm3, 0.0, %v2122_v7  ;;  %v2293_v3 = vsel %vm889_vm4, %v881_v0, 0.0 }
  0xe2   : > { %v2300_v4 = vsel %vm889_vm4, %v882_v2, 0.0 }
  0xe7   : > { %v2124_v8 = vpop.permute.xlu0 %812 }
  0xe8   : > { %v883_v58 = vsel %vm856_vm3, 0.0, %v2124_v8 }
  0xe9   : > { %v2126_v9 = vpop.permute.xlu1 %814  ;;  %v2307_v6 = vsel %vm889_vm4, %v883_v58, 0.0 }
  0xea   : > { %v884_v5 = vsel %vm856_vm3, 0.0, %v2126_v9 }
  0xeb   : > { %v2128_v10 = vpop.permute.xlu0 %816  ;;  %v2314_v8 = vsel %vm889_vm4, %v884_v5, 0.0 }
  0xec   : > { %v885_v7 = vsel %vm856_vm3, 0.0, %v2128_v10  ;;  %2996 = vst [vmem:[#allocation4_spill] sm:$0xff] %v2314_v8 }
  0xed   : > { %v2130_v11 = vpop.permute.xlu1 %818  ;;  %v2321_v9 = vsel %vm889_vm4, %v885_v7, 0.0 }
  0xee   : > { %2997 = vst [vmem:[#allocation5_spill] sm:$0xff] %v2321_v9 }
  0xef   : > { %v821_v12 = vpop.permute.xlu0 %820 }
  0xf0   : > { %v887_v13 = vsel %vm856_vm3, 0.0, %v821_v12  ;;  %v886_v12 = vsel %vm856_vm3, 0.0, %v2130_v11 }
  0xf1   : > { %v2134_v14 = vsel %vm889_vm4, %v887_v13, 0.0  ;;  %v823_v15 = vpop.permute.xlu1 %822  ;;  %v2326_v10 = vsel %vm889_vm4, %v886_v12, 0.0 }
  0xf2   : > { %2994 = vst [vmem:[#allocation2_spill] sm:$0xff] %v2134_v14  ;;  %v888_v16 = vsel %vm856_vm3, 0.0, %v823_v15  ;;  %1014 = vrot.lane.b32.xlu0 %v2134_v14, %s1875_s13  ;;  %2998 = vst [vmem:[#allocation6_spill] sm:$0xff] %v2326_v10 }
  0xf3   : > { %v2140_v18 = vsel %vm889_vm4, %v888_v16, 0.0 }
  0xf4   : > { %2995 = vst [vmem:[#allocation3_spill] sm:$0xff] %v2140_v18  ;;  %1016 = vrot.lane.b32.xlu1 %v2140_v18, %s1875_s13 }
  0xf6   : > { %1082 = vrot.lane.b32.xlu0 %v2094_v44, %s1876_s14 }
  0xf8   : > { %1084 = vrot.lane.b32.xlu1 %v2100_v48, %s1876_s14 }
  0xfa   : > { %958 = vrot.lane.b32.xlu0 %v2151_v22, %s1875_s13 }
  0xfc   : > { %960 = vrot.lane.b32.xlu1 %v2157_v17, %s1875_s13 }
  0xfe   : > { %962 = vrot.lane.b32.xlu0 %v2163_v24, %s1875_s13 }
 0x100   : > { %964 = vrot.lane.b32.xlu1 %v2169_v26, %s1875_s13 }
 0x102   : > { %966 = vrot.lane.b32.xlu0 %v2175_v29, %s1875_s13 }
 0x104   : > { %968 = vrot.lane.b32.xlu1 %v2181_v30, %s1875_s13 }
 0x106   : > { %970 = vrot.lane.b32.xlu0 %v2187_v33, %s1875_s13 }
 0x108   : > { %972 = vrot.lane.b32.xlu1 %v2193_v32, %s1875_s13 }
 0x109   : > { %v955_v11 = vpop.permute.xlu0 %954 }
 0x10a   : > { %974 = vrot.lane.b32.xlu0 %v2199_v36, %s1875_s13  ;;  %v1050_v19 = vadd.f32 %v955_v11, %v2094_v44 }
 0x10c   : > { %976 = vrot.lane.b32.xlu1 %v2205_v38, %s1875_s13 }
 0x10e   : > { %978 = vrot.lane.b32.xlu0 %v2211_v40, %s1875_s13  ;;  %v957_v13 = vpop.permute.xlu1 %956 }
 0x10f   : > { %v1051_v23 = vadd.f32 %v957_v13, %v2100_v48 }
 0x110   : > { %980 = vrot.lane.b32.xlu1 %v2217_v42, %s1875_s13 }
 0x112   : > { %982 = vrot.lane.b32.xlu0 %v2223_v45, %s1875_s13 }
 0x114   : > { %984 = vrot.lane.b32.xlu1 %v2230_v47, %s1875_s13 }
 0x116   : > { %986 = vrot.lane.b32.xlu0 %v2237_v50, %s1875_s13 }
 0x118   : > { %988 = vrot.lane.b32.xlu1 %v2244_v52, %s1875_s13 }
 0x11a   : > { %990 = vrot.lane.b32.xlu0 %v2251_v54, %s1875_s13 }
 0x11c   : > { %992 = vrot.lane.b32.xlu1 %v2258_v56, %s1875_s13 }
 0x11e   : > { %994 = vrot.lane.b32.xlu0 %v2265_v59, %s1875_s13 }
 0x120   : > { %996 = vrot.lane.b32.xlu1 %v2272_v61, %s1875_s13 }
 0x122   : > { %998 = vrot.lane.b32.xlu0 %v2279_v63, %s1875_s13 }
 0x124   : > { %1000 = vrot.lane.b32.xlu1 %v2286_v1, %s1875_s13 }
 0x126   : > { %1002 = vrot.lane.b32.xlu0 %v2293_v3, %s1875_s13 }
 0x128   : > { %1004 = vrot.lane.b32.xlu1 %v2300_v4, %s1875_s13 }
 0x12a   : > { %1006 = vrot.lane.b32.xlu0 %v2307_v6, %s1875_s13 }
 0x12c   : > { %1008 = vrot.lane.b32.xlu1 %v2314_v8, %s1875_s13 }
 0x12e   : > { %1010 = vrot.lane.b32.xlu0 %v2321_v9, %s1875_s13 }
 0x130   : > { %1012 = vrot.lane.b32.xlu1 %v2326_v10, %s1875_s13 }
 0x132   : > { %1086 = vrot.lane.b32.xlu0 %v2151_v22, %s1876_s14 }
 0x134   : > { %1088 = vrot.lane.b32.xlu1 %v2157_v17, %s1876_s14 }
 0x136   : > { %1090 = vrot.lane.b32.xlu0 %v2163_v24, %s1876_s14 }
 0x138   : > { %1092 = vrot.lane.b32.xlu1 %v2169_v26, %s1876_s14 }
 0x13a   : > { %1094 = vrot.lane.b32.xlu0 %v2175_v29, %s1876_s14 }
 0x13c   : > { %1096 = vrot.lane.b32.xlu1 %v2181_v30, %s1876_s14 }
 0x13e   : > { %1098 = vrot.lane.b32.xlu0 %v2187_v33, %s1876_s14 }
 0x140   : > { %1100 = vrot.lane.b32.xlu1 %v2193_v32, %s1876_s14 }
 0x142   : > { %1102 = vrot.lane.b32.xlu0 %v2199_v36, %s1876_s14 }
 0x144   : > { %1104 = vrot.lane.b32.xlu1 %v2205_v38, %s1876_s14 }
 0x146   : > { %1106 = vrot.lane.b32.xlu0 %v2211_v40, %s1876_s14 }
 0x148   : > { %1108 = vrot.lane.b32.xlu1 %v2217_v42, %s1876_s14 }
 0x14a   : > { %1110 = vrot.lane.b32.xlu0 %v2223_v45, %s1876_s14 }
 0x14c   : > { %1112 = vrot.lane.b32.xlu1 %v2230_v47, %s1876_s14 }
 0x14e   : > { %1114 = vrot.lane.b32.xlu0 %v2237_v50, %s1876_s14 }
 0x150   : > { %1116 = vrot.lane.b32.xlu1 %v2244_v52, %s1876_s14 }
 0x152   : > { %1118 = vrot.lane.b32.xlu0 %v2251_v54, %s1876_s14 }
 0x154   : > { %1120 = vrot.lane.b32.xlu1 %v2258_v56, %s1876_s14 }
 0x156   : > { %1122 = vrot.lane.b32.xlu0 %v2265_v59, %s1876_s14 }
 0x158   : > { %1124 = vrot.lane.b32.xlu1 %v2272_v61, %s1876_s14 }
 0x15a   : > { %1126 = vrot.lane.b32.xlu0 %v2279_v63, %s1876_s14 }
 0x15c   : > { %1128 = vrot.lane.b32.xlu1 %v2286_v1, %s1876_s14 }
 0x15e   : > { %1130 = vrot.lane.b32.xlu0 %v2293_v3, %s1876_s14 }
 0x160   : > { %1132 = vrot.lane.b32.xlu1 %v2300_v4, %s1876_s14 }
 0x162   : > { %1134 = vrot.lane.b32.xlu0 %v2307_v6, %s1876_s14 }
 0x164   : > { %v2380_v15 = vpop.permute.xlu0 %1014  ;;  %1136 = vrot.lane.b32.xlu1 %v2314_v8, %s1876_s14 }
 0x165   : > { %2999 = vst [vmem:[#allocation7_spill] sm:$0xff] %v2380_v15 }
 0x166   : > { %1138 = vrot.lane.b32.xlu0 %v2321_v9, %s1876_s14  ;;  %v2386_v16 = vpop.permute.xlu1 %1016 }
 0x167   : > { %3000 = vst [vmem:[#allocation8_spill] sm:$0xff] %v2386_v16 }
 0x168   : > { %v1083_v20 = vpop.permute.xlu0 %1082  ;;  %1140 = vrot.lane.b32.xlu1 %v2326_v10, %s1876_s14 }
 0x169   : > { %v1178_v21 = vadd.f32 %v1083_v20, %v1050_v19 }
 0x16a   : > { %1142 = vrot.lane.b32.xlu0 %v2134_v14, %s1876_s14  ;;  %v1085_v25 = vpop.permute.xlu1 %1084 }
 0x16b   : > { %v1210_v28 = vmul.f32 0.037037037, %v1178_v21  ;;  %v1179_v27 = vadd.f32 %v1085_v25, %v1051_v23 }
 0x16c   : > { %v959_v31 = vpop.permute.xlu0 %958  ;;  %1144 = vrot.lane.b32.xlu1 %v2140_v18, %s1876_s14 }
 0x16d   : > { %v1242_v34 = vadd.f32 1.0, %v1210_v28  ;;  %v1211_v35 = vmul.f32 0.037037037, %v1179_v27 }
 0x16e   : > { %v961_v44 = vpop.permute.xlu1 %960 }
 0x16f   : > { %1706 = vrsqrt.f32 %v1242_v34  ;;  %v1243_v37 = vadd.f32 1.0, %v1211_v35  ;;  %v1834_v34 = vld [vmem:[%s1903_s11] sm:$0xff] }
 0x170   : > { %v963_v39 = vpop.permute.xlu0 %962 }
 0x171   : > { %1708 = vrsqrt.f32 %v1243_v37  ;;  %v1054_v18 = vadd.f32 %v963_v39, %v2163_v24 }
 0x172   : > { %v965_v41 = vpop.permute.xlu1 %964 }
 0x173   : > { %v1055_v9 = vadd.f32 %v965_v41, %v2169_v26 }
 0x174   : > { %v2396_v48 = vpop.permute.xlu0 %966 }
 0x176   : > { %v2398_v43 = vpop.permute.xlu1 %968 }
 0x178   : > { %v2400_v46 = vpop.permute.xlu0 %970 }
 0x179   : > { %v1707_v49 = vpop.eup %1706  ;;  %v1058_v26 = vadd.f32 %v2400_v46, %v2187_v33 }
 0x17a   : > { %1710 = vrsqrt.f32 %v1707_v49  ;;  %v2402_v51 = vpop.permute.xlu1 %972  ;;  %vm1308_vm5 = vcmp.eq.f32.partialorder %v1707_v49, inf  ;;  %v1311_v7 = vand.u32 2147483648, %v1707_v49  ;;  %vm1310_vm6 = vcmp.eq.f32.partialorder %v1707_v49, 0.0 }
 0x17b   : > { %v1709_v53 = vpop.eup %1708 }
 0x17c   : > { %1712 = vrsqrt.f32 %v1709_v53  ;;  %v2404_v55 = vpop.permute.xlu0 %974  ;;  %vm1315_vm7 = vcmp.eq.f32.partialorder %v1709_v53, inf  ;;  %v1318_v20 = vand.u32 2147483648, %v1709_v53  ;;  %vm1317_vm8 = vcmp.eq.f32.partialorder %v1709_v53, 0.0 }
 0x17e   : > { %v2406_v57 = vpop.permute.xlu1 %976 }
 0x180   : > { %v2408_v60 = vpop.permute.xlu0 %978 }
 0x182   : > { %v2410_v62 = vpop.permute.xlu1 %980 }
 0x184   : > { %v1711_v0 = vpop.eup %1710  ;;  %v2412_v2 = vpop.permute.xlu0 %982 }
 0x185   : > { %v1307_v58 = vmul.f32 %v1711_v0, %v1707_v49 }
 0x186   : > { %v1713_v5 = vpop.eup %1712  ;;  %v2414_v12 = vpop.permute.xlu1 %984 }
 0x187   : > { %v1309_v11 = vsel %vm1308_vm5, %v1707_v49, %v1307_v58  ;;  %v1314_v13 = vmul.f32 %v1713_v5, %v1709_v53 }
 0x188   : > { %v1312_v19 = vsel %vm1310_vm6, %v1311_v7, %v1309_v11  ;;  %v2416_v23 = vpop.permute.xlu0 %986 }
 0x189   : > { %v1530_v21 = vmul.f32 %v1707_v49, %v1312_v19  ;;  %v1316_v25 = vsel %vm1315_vm7, %v1709_v53, %v1314_v13  ;;  %v1835_v49 = vld [vmem:[%s1903_s11 + $0x8] sm:$0xff] }
 0x18a   : > { %v1319_v28 = vsel %vm1317_vm8, %v1318_v20, %v1316_v25  ;;  %v2425_v27 = vpop.permute.xlu1 %988 }
 0x18b   : > { %v1562_v35 = vmul.f32 %v1834_v34, %v1530_v21  ;;  %v1531_v37 = vmul.f32 %v1709_v53, %v1319_v28 }
 0x18c   : > { %v2428_v0 = vpop.permute.xlu0 %990 }
 0x18d   : > { %1595 = vst.msk [vmem:[%s2423_s17] sm:$0xff] %vm1594_vm9, %v1562_v35  ;;  %v1563_v58 = vmul.f32 %v1835_v49, %v1531_v37  ;;  %v1052_v35 = vadd.f32 %v959_v31, %v2151_v22  ;;  %v1053_v49 = vadd.f32 %v961_v44, %v2157_v17  ;;  %v1057_v44 = vadd.f32 %v2398_v43, %v2181_v30 }
 0x18e   : > { %v2433_v5 = vpop.permute.xlu1 %992  ;;  %v1061_v43 = vadd.f32 %v2406_v57, %v2205_v38 }
 0x18f   : > { %1596 = vst.msk [vmem:[%s2423_s17 + $0x8] sm:$0xff] %vm1594_vm9, %v1563_v58 }
 0x190   : > { %v2437_v7 = vpop.permute.xlu0 %994 }
 0x192   : > { %v2439_v11 = vpop.permute.xlu1 %996 }
 0x194   : > { %v2441_v13 = vpop.permute.xlu0 %998 }
 0x196   : > { %v2443_v19 = vpop.permute.xlu1 %1000 }
 0x198   : > { %v2445_v20 = vpop.permute.xlu0 %1002 }
 0x19a   : > { %v2447_v53 = vpop.permute.xlu1 %1004 }
 0x19c   : > { %v2449_v21 = vpop.permute.xlu0 %1006 }
 0x19d   : > { %3001 = vst [vmem:[#allocation9_spill] sm:$0xff] %v2449_v21 }
 0x19e   : > { %v2451_v25 = vpop.permute.xlu1 %1008 }
 0x19f   : > { %3002 = vst [vmem:[#allocation10_spill] sm:$0xff] %v2451_v25 }
 0x1a0   : > { %v2453_v28 = vpop.permute.xlu0 %1010 }
 0x1a1   : > { %3003 = vst [vmem:[#allocation11_spill] sm:$0xff] %v2453_v28 }
 0x1a2   : > { %v2455_v34 = vpop.permute.xlu1 %1012 }
 0x1a3   : > { %3004 = vst [vmem:[#allocation12_spill] sm:$0xff] %v2455_v34  ;;  %v1056_v34 = vadd.f32 %v2396_v48, %v2175_v29  ;;  %v1060_v48 = vadd.f32 %v2404_v55, %v2199_v36  ;;  %v1065_v36 = vadd.f32 %v2414_v12, %v2230_v47 }
 0x1a4   : > { %v1087_v37 = vpop.permute.xlu0 %1086 }
 0x1a5   : > { %v1180_v58 = vadd.f32 %v1087_v37, %v1052_v35 }
 0x1a6   : > { %v1089_v16 = vpop.permute.xlu1 %1088 }
 0x1a7   : > { %v1212_v10 = vmul.f32 0.037037037, %v1180_v58  ;;  %v1181_v15 = vadd.f32 %v1089_v16, %v1053_v49  ;;  %v2485_v49 = vadd.f32 %v2416_v23, %v2237_v50  ;;  %v2500_v50 = vadd.f32 %v2433_v5, %v2258_v56 }
 0x1a8   : > { %v1091_v14 = vpop.permute.xlu0 %1090  ;;  %v2515_v56 = vadd.f32 %v2441_v13, %v2279_v63 }
 0x1a9   : > { %v1244_v8 = vadd.f32 1.0, %v1212_v10  ;;  %v1213_v25 = vmul.f32 0.037037037, %v1181_v15  ;;  %v1182_v21 = vadd.f32 %v1091_v14, %v1054_v18 }
 0x1aa   : > { %v1093_v28 = vpop.permute.xlu1 %1092 }
 0x1ab   : > { %1714 = vrsqrt.f32 %v1244_v8  ;;  %v1245_v22 = vadd.f32 1.0, %v1213_v25  ;;  %v1214_v31 = vmul.f32 0.037037037, %v1182_v21  ;;  %v1183_v17 = vadd.f32 %v1093_v28, %v1055_v9 }
 0x1ac   : > { %v1095_v24 = vpop.permute.xlu0 %1094  ;;  %v1059_v8 = vadd.f32 %v2402_v51, %v2193_v32  ;;  %v1062_v28 = vadd.f32 %v2408_v60, %v2211_v40  ;;  %v1063_v32 = vadd.f32 %v2410_v62, %v2217_v42  ;;  %v1064_v51 = vadd.f32 %v2412_v2, %v2223_v45 }
 0x1ad   : > { %1716 = vrsqrt.f32 %v1245_v22  ;;  %v1246_v16 = vadd.f32 1.0, %v1214_v31  ;;  %v1215_v39 = vmul.f32 0.037037037, %v1183_v17  ;;  %v1184_v35 = vadd.f32 %v1095_v24, %v1056_v34 }
 0x1ae   : > { %v1097_v14 = vpop.permute.xlu1 %1096  ;;  %v2489_v40 = vadd.f32 %v2425_v27, %v2244_v52  ;;  %v2493_v42 = vadd.f32 %v2428_v0, %v2251_v54  ;;  %v2504_v52 = vadd.f32 %v2437_v7, %v2265_v59  ;;  %v2508_v54 = vadd.f32 %v2439_v11, %v2272_v61 }
 0x1af   : > { %1718 = vrsqrt.f32 %v1246_v16  ;;  %v1247_v18 = vadd.f32 1.0, %v1215_v39  ;;  %v1216_v29 = vmul.f32 0.037037037, %v1184_v35  ;;  %v1185_v10 = vadd.f32 %v1097_v14, %v1057_v44 }
 0x1b0   : > { %v1099_v9 = vpop.permute.xlu0 %1098  ;;  %v2519_v59 = vadd.f32 %v2443_v19, %v2286_v1  ;;  %v2523_v61 = vadd.f32 %v2445_v20, %v2293_v3 }
 0x1b1   : > { %1720 = vrsqrt.f32 %v1247_v18  ;;  %v1248_v15 = vadd.f32 1.0, %v1216_v29  ;;  %v1217_v30 = vmul.f32 0.037037037, %v1185_v10  ;;  %v1186_v41 = vadd.f32 %v1099_v9, %v1058_v26 }
 0x1b2   : > { %v1101_v33 = vpop.permute.xlu1 %1100 }
 0x1b3   : > { %1722 = vrsqrt.f32 %v1248_v15  ;;  %v1249_v46 = vadd.f32 1.0, %v1217_v30  ;;  %v1218_v21 = vmul.f32 0.037037037, %v1186_v41  ;;  %v1187_v25 = vadd.f32 %v1101_v33, %v1059_v8 }
 0x1b4   : > { %v1103_v55 = vpop.permute.xlu0 %1102 }
 0x1b5   : > { %v2481_v34 = vpop.eup %1714  ;;  %1724 = vrsqrt.f32 %v1249_v46  ;;  %v1250_v38 = vadd.f32 1.0, %v1218_v21  ;;  %v1219_v57 = vmul.f32 0.037037037, %v1187_v25  ;;  %v1188_v37 = vadd.f32 %v1103_v55, %v1060_v48 }
 0x1b6   : > { %1726 = vrsqrt.f32 %v2481_v34  ;;  %v1105_v45 = vpop.permute.xlu1 %1104  ;;  %vm1322_vm10 = vcmp.eq.f32.partialorder %v2481_v34, inf  ;;  %vm1324_vm11 = vcmp.eq.f32.partialorder %v2481_v34, 0.0  ;;  %v1325_v63 = vand.u32 2147483648, %v2481_v34 }
 0x1b7   : > { %v2496_v47 = vpop.eup %1716  ;;  %1728 = vrsqrt.f32 %v1250_v38  ;;  %v1251_v60 = vadd.f32 1.0, %v1219_v57  ;;  %v1220_v62 = vmul.f32 0.037037037, %v1188_v37  ;;  %v1189_v2 = vadd.f32 %v1105_v45, %v1061_v43 }
 0x1b8   : > { %1730 = vrsqrt.f32 %v2496_v47  ;;  %v1107_v12 = vpop.permute.xlu0 %1106  ;;  %vm1329_vm12 = vcmp.eq.f32.partialorder %v2496_v47, inf  ;;  %vm1331_vm13 = vcmp.eq.f32.partialorder %v2496_v47, 0.0  ;;  %v1332_v17 = vand.u32 2147483648, %v2496_v47 }
 0x1b9   : > { %v2511_v23 = vpop.eup %1718  ;;  %1732 = vrsqrt.f32 %v1251_v60  ;;  %v1252_v27 = vadd.f32 1.0, %v1220_v62  ;;  %v1221_v0 = vmul.f32 0.037037037, %v1189_v2  ;;  %v1190_v58 = vadd.f32 %v1107_v12, %v1062_v28  ;;  %v1836_v60 = vld [vmem:[%s1903_s11 + $0x10] sm:$0xff] }
 0x1ba   : > { %1734 = vrsqrt.f32 %v2511_v23  ;;  %v1109_v5 = vpop.permute.xlu1 %1108  ;;  %vm1336_vm14 = vcmp.eq.f32.partialorder %v2511_v23, inf  ;;  %vm1338_vm15 = vcmp.eq.f32.partialorder %v2511_v23, 0.0  ;;  %v1339_v26 = vand.u32 2147483648, %v2511_v23 }
 0x1bb   : > { %v2526_v7 = vpop.eup %1720  ;;  %1736 = vrsqrt.f32 %v1252_v27  ;;  %v1253_v11 = vadd.f32 1.0, %v1221_v0  ;;  %v1222_v22 = vmul.f32 0.037037037, %v1190_v58  ;;  %v1191_v31 = vadd.f32 %v1109_v5, %v1063_v32 }
 0x1bc   : > { %1738 = vrsqrt.f32 %v2526_v7  ;;  %v1111_v1 = vpop.permute.xlu0 %1110  ;;  %vm1343_vm0 = vcmp.eq.f32.partialorder %v2526_v7, inf  ;;  %vm1345_vm1 = vcmp.eq.f32.partialorder %v2526_v7, 0.0  ;;  %v1346_v15 = vand.u32 2147483648, %v2526_v7 }
 0x1bd   : > { %v2532_v3 = vpop.eup %1722  ;;  %1740 = vrsqrt.f32 %v1253_v11  ;;  %v1254_v13 = vadd.f32 1.0, %v1222_v22  ;;  %v1223_v19 = vmul.f32 0.037037037, %v1191_v31  ;;  %v1192_v20 = vadd.f32 %v1111_v1, %v1064_v51  ;;  %v1837_v11 = vld [vmem:[%s1903_s11 + $0x18] sm:$0xff] }
 0x1be   : > { %1742 = vrsqrt.f32 %v2532_v3  ;;  %v1113_v44 = vpop.permute.xlu1 %1112  ;;  %vm1350_vm2 = vcmp.eq.f32.partialorder %v2532_v3, inf  ;;  %vm1352_vm3 = vcmp.eq.f32.partialorder %v2532_v3, 0.0  ;;  %v1353_v43 = vand.u32 2147483648, %v2532_v3 }
 0x1bf   : > { %v2538_v24 = vpop.eup %1724  ;;  %1744 = vrsqrt.f32 %v1254_v13  ;;  %v1255_v16 = vadd.f32 1.0, %v1223_v19  ;;  %v1224_v39 = vmul.f32 0.037037037, %v1192_v20  ;;  %v1193_v14 = vadd.f32 %v1113_v44, %v1065_v36  ;;  %v1838_v44 = vld [vmem:[%s1903_s11 + $0x20] sm:$0xff] }
 0x1c0   : > { %v1727_v35 = vpop.eup %1726  ;;  %1746 = vrsqrt.f32 %v2538_v24  ;;  %v2544_v18 = vpop.permute.xlu0 %1114  ;;  %vm1357_vm4 = vcmp.eq.f32.partialorder %v2538_v24, inf  ;;  %vm1359_vm5 = vcmp.eq.f32.partialorder %v2538_v24, 0.0  ;;  %v1360_v55 = vand.u32 2147483648, %v2538_v24 }
 0x1c1   : > { %v2546_v29 = vpop.eup %1728  ;;  %v1321_v10 = vmul.f32 %v1727_v35, %v2481_v34  ;;  %1748 = vrsqrt.f32 %v1255_v16  ;;  %v1256_v8 = vadd.f32 1.0, %v1224_v39  ;;  %v1225_v25 = vmul.f32 0.037037037, %v1193_v14 }
 0x1c2   : > { %v1731_v9 = vpop.eup %1730  ;;  %1750 = vrsqrt.f32 %v2546_v29  ;;  %v2562_v33 = vpop.permute.xlu1 %1116  ;;  %vm1364_vm6 = vcmp.eq.f32.partialorder %v2546_v29, inf  ;;  %vm1366_vm7 = vcmp.eq.f32.partialorder %v2546_v29, 0.0 }
 0x1c3   : > { %v2554_v30 = vpop.eup %1732  ;;  %v1323_v41 = vsel %vm1322_vm10, %v2481_v34, %v1321_v10  ;;  %v1328_v48 = vmul.f32 %v1731_v9, %v2496_v47  ;;  %1752 = vrsqrt.f32 %v1256_v8  ;;  %v2597_v5 = vadd.f32 1.0, %v1225_v25 }
 0x1c4   : > { %v1735_v46 = vpop.eup %1734  ;;  %v1326_v21 = vsel %vm1324_vm11, %v1325_v63, %v1323_v41  ;;  %1754 = vrsqrt.f32 %v2554_v30  ;;  %v2577_v38 = vpop.permute.xlu0 %1118  ;;  %vm1371_vm8 = vcmp.eq.f32.partialorder %v2554_v30, inf  ;;  %vm1373_vm10 = vcmp.eq.f32.partialorder %v2554_v30, 0.0 }
 0x1c5   : > { %v2568_v28 = vpop.eup %1736  ;;  %v1532_v32 = vmul.f32 %v2481_v34, %v1326_v21  ;;  %v1330_v51 = vsel %vm1329_vm12, %v2496_v47, %v1328_v48  ;;  %v1335_v36 = vmul.f32 %v1735_v46, %v2511_v23  ;;  %v1367_v34 = vand.u32 2147483648, %v2546_v29 }
 0x1c6   : > { %v1739_v57 = vpop.eup %1738  ;;  %v1333_v37 = vsel %vm1331_vm13, %v1332_v17, %v1330_v51  ;;  %1756 = vrsqrt.f32 %v2568_v28  ;;  %v2610_v13 = vpop.permute.xlu1 %1120  ;;  %v1374_v17 = vand.u32 2147483648, %v2554_v30  ;;  %vm1378_vm11 = vcmp.eq.f32.partialorder %v2568_v28, inf }
 0x1c7   : > { %v2584_v45 = vpop.eup %1740  ;;  %v1564_v62 = vmul.f32 %v1836_v60, %v1532_v32  ;;  %v1533_v2 = vmul.f32 %v2496_v47, %v1333_v37  ;;  %v1337_v12 = vsel %vm1336_vm14, %v2511_v23, %v1335_v36  ;;  %v1342_v27 = vmul.f32 %v1739_v57, %v2526_v7 }
 0x1c8   : > { %v1743_v0 = vpop.eup %1742  ;;  %v1340_v58 = vsel %vm1338_vm15, %v1339_v26, %v1337_v12  ;;  %1758 = vrsqrt.f32 %v2584_v45  ;;  %v2627_v14 = vpop.permute.xlu0 %1122  ;;  %vm1380_vm12 = vcmp.eq.f32.partialorder %v2568_v28, 0.0  ;;  %v1381_v9 = vand.u32 2147483648, %v2568_v28 }
 0x1c9   : > { %v2599_v47 = vpop.eup %1744  ;;  %1597 = vst.msk [vmem:[%s2423_s17 + $0x10] sm:$0xff] %vm1594_vm9, %v1564_v62  ;;  %v1565_v22 = vmul.f32 %v1837_v11, %v1533_v2  ;;  %v1534_v31 = vmul.f32 %v2511_v23, %v1340_v58  ;;  %v1344_v63 = vsel %vm1343_vm0, %v2526_v7, %v1342_v27  ;;  %v1349_v1 = vmul.f32 %v1743_v0, %v2532_v3 }
 0x1ca   : > { %v1747_v19 = vpop.eup %1746  ;;  %v1347_v20 = vsel %vm1345_vm1, %v1346_v15, %v1344_v63  ;;  %1760 = vrsqrt.f32 %v2599_v47  ;;  %vm1385_vm13 = vcmp.eq.f32.partialorder %v2584_v45, inf  ;;  %v1839_v15 = vld [vmem:[%s1903_s11 + $0x28] sm:$0xff]  ;;  %vm1387_vm14 = vcmp.eq.f32.partialorder %v2584_v45, 0.0  ;;  %v2658_v37 = vpop.permute.xlu1 %1124 }
 0x1cb   : > { %v2617_v23 = vpop.eup %1748  ;;  %1598 = vst.msk [vmem:[%s2423_s17 + $0x18] sm:$0xff] %vm1594_vm9, %v1565_v22  ;;  %v1566_v16 = vmul.f32 %v1838_v44, %v1534_v31  ;;  %v1535_v39 = vmul.f32 %v2526_v7, %v1347_v20  ;;  %v1351_v35 = vsel %vm1350_vm2, %v2532_v3, %v1349_v1  ;;  %v1356_v26 = vmul.f32 %v1747_v19, %v2538_v24 }
 0x1cc   : > { %v1751_v10 = vpop.eup %1750  ;;  %v1354_v8 = vsel %vm1352_vm3, %v1353_v43, %v1351_v35  ;;  %v1388_v32 = vand.u32 2147483648, %v2584_v45  ;;  %vm1392_vm15 = vcmp.eq.f32.partialorder %v2599_v47, inf  ;;  %1762 = vrsqrt.f32 %v2617_v23  ;;  %v1127_v58 = vpop.permute.xlu0 %1126  ;;  %v1843_v35 = vld [vmem:[%s1903_s11 + $0x48] sm:$0xff] }
 0x1cd   : > { %v2634_v7 = vpop.eup %1752  ;;  %1599 = vst.msk [vmem:[%s2423_s17 + $0x20] sm:$0xff] %vm1594_vm9, %v1566_v16  ;;  %v1567_v41 = vmul.f32 %v1839_v15, %v1535_v39  ;;  %v1536_v48 = vmul.f32 %v2532_v3, %v1354_v8  ;;  %v1358_v43 = vsel %vm1357_vm4, %v2538_v24, %v1356_v26  ;;  %v1363_v46 = vmul.f32 %v1751_v10, %v2546_v29  ;;  %v1840_v3 = vld [vmem:[%s1903_s11 + $0x30] sm:$0xff] }
 0x1ce   : > { %v1755_v21 = vpop.eup %1754  ;;  %v1361_v25 = vsel %vm1359_vm5, %v1360_v55, %v1358_v43  ;;  %vm1394_vm0 = vcmp.eq.f32.partialorder %v2599_v47, 0.0  ;;  %v1395_v2 = vand.u32 2147483648, %v2599_v47  ;;  %1764 = vrsqrt.f32 %v2634_v7  ;;  %v1129_v15 = vpop.permute.xlu1 %1128 }
 0x1cf   : > { %1600 = vst.msk [vmem:[%s2423_s17 + $0x28] sm:$0xff] %vm1594_vm9, %v1567_v41  ;;  %v1568_v51 = vmul.f32 %v1840_v3, %v1536_v48  ;;  %v1537_v36 = vmul.f32 %v2538_v24, %v1361_v25  ;;  %v1365_v57 = vsel %vm1364_vm6, %v2546_v29, %v1363_v46  ;;  %v1370_v55 = vmul.f32 %v1755_v21, %v2554_v30  ;;  %v1841_v24 = vld [vmem:[%s1903_s11 + $0x38] sm:$0xff] }
 0x1d0   : > { %v1757_v60 = vpop.eup %1756  ;;  %v1368_v62 = vsel %vm1366_vm7, %v1367_v34, %v1365_v57  ;;  %vm1399_vm1 = vcmp.eq.f32.partialorder %v2617_v23, inf  ;;  %v1402_v31 = vand.u32 2147483648, %v2617_v23  ;;  %v1409_v63 = vand.u32 2147483648, %v2634_v7  ;;  %v1131_v43 = vpop.permute.xlu0 %1130 }
 0x1d1   : > { %1601 = vst.msk [vmem:[%s2423_s17 + $0x30] sm:$0xff] %vm1594_vm9, %v1568_v51  ;;  %v1569_v12 = vmul.f32 %v1841_v24, %v1537_v36  ;;  %v1538_v27 = vmul.f32 %v2546_v29, %v1368_v62  ;;  %v1372_v0 = vsel %vm1371_vm8, %v2554_v30, %v1370_v55  ;;  %v1377_v34 = vmul.f32 %v1757_v60, %v2568_v28  ;;  %v1842_v29 = vld [vmem:[%s1903_s11 + $0x40] sm:$0xff] }
 0x1d2   : > { %v1759_v11 = vpop.eup %1758  ;;  %v1375_v22 = vsel %vm1373_vm10, %v1374_v17, %v1372_v0  ;;  %1766 = vrsqrt.f32 %v2597_v5  ;;  %vm1401_vm2 = vcmp.eq.f32.partialorder %v2617_v23, 0.0  ;;  %vm1406_vm3 = vcmp.eq.f32.partialorder %v2634_v7, inf }
 0x1d3   : > { %1602 = vst.msk [vmem:[%s2423_s17 + $0x38] sm:$0xff] %vm1594_vm9, %v1569_v12  ;;  %v1570_v1 = vmul.f32 %v1842_v29, %v1538_v27  ;;  %v1539_v19 = vmul.f32 %v2554_v30, %v1375_v22  ;;  %v1379_v20 = vsel %vm1378_vm11, %v2568_v28, %v1377_v34  ;;  %v1384_v17 = vmul.f32 %v1759_v11, %v2584_v45  ;;  %v1133_v27 = vpop.permute.xlu1 %1132  ;;  %v3005_v11 = vld [vmem:[#allocation9_spill] sm:$0xff] }
 0x1d4   : > { %v1761_v44 = vpop.eup %1760  ;;  %v1382_v16 = vsel %vm1380_vm12, %v1381_v9, %v1379_v20  ;;  %v1194_v5 = vadd.f32 %v2544_v18, %v2485_v49  ;;  %v1195_v30 = vadd.f32 %v2562_v33, %v2489_v40  ;;  %v1196_v39 = vadd.f32 %v2577_v38, %v2493_v42  ;;  %v1844_v33 = vld [vmem:[%s1903_s11 + $0x50] sm:$0xff]  ;;  %v1135_v34 = vpop.permute.xlu0 %1134 }
 0x1d5   : > { %1603 = vst.msk [vmem:[%s2423_s17 + $0x40] sm:$0xff] %vm1594_vm9, %v1570_v1  ;;  %v1571_v26 = vmul.f32 %v1843_v35, %v1539_v19  ;;  %v1540_v10 = vmul.f32 %v2568_v28, %v1382_v16  ;;  %v1386_v8 = vsel %vm1385_vm13, %v2584_v45, %v1384_v17  ;;  %v1391_v9 = vmul.f32 %v1761_v44, %v2599_v47  ;;  %v3007_v35 = vld [vmem:[#allocation10_spill] sm:$0xff] }
 0x1d6   : > { %v1389_v49 = vsel %vm1387_vm14, %v1388_v32, %v1386_v8  ;;  %v1226_v40 = vmul.f32 0.037037037, %v1194_v5  ;;  %v1227_v42 = vmul.f32 0.037037037, %v1195_v30  ;;  %v1228_v18 = vmul.f32 0.037037037, %v1196_v39  ;;  %v1763_v46 = vpop.eup %1762 }
 0x1d7   : > { %1604 = vst.msk [vmem:[%s2423_s17 + $0x48] sm:$0xff] %vm1594_vm9, %v1571_v26  ;;  %v1572_v38 = vmul.f32 %v1844_v33, %v1540_v10  ;;  %v1541_v28 = vmul.f32 %v2584_v45, %v1389_v49  ;;  %v1393_v41 = vsel %vm1392_vm15, %v2599_v47, %v1391_v9  ;;  %v1197_v48 = vadd.f32 %v2610_v13, %v2500_v50  ;;  %v1845_v45 = vld [vmem:[%s1903_s11 + $0x58] sm:$0xff]  ;;  %v1137_v30 = vpop.permute.xlu1 %1136  ;;  %v3006_v39 = vld [vmem:[#allocation4_spill] sm:$0xff]  ;;  %v3009_v49 = vld [vmem:[#allocation11_spill] sm:$0xff] }
 0x1d8   : > { %v1396_v21 = vsel %vm1394_vm0, %v1395_v2, %v1393_v41  ;;  %v1258_v25 = vadd.f32 1.0, %v1226_v40  ;;  %v1259_v32 = vadd.f32 1.0, %v1227_v42  ;;  %v1260_v3 = vadd.f32 1.0, %v1228_v18  ;;  %v1765_v50 = vpop.eup %1764  ;;  %v1846_v2 = vld [vmem:[%s1903_s11 + $0x60] sm:$0xff]  ;;  %v3008_v9 = vld [vmem:[#allocation5_spill] sm:$0xff] }
 0x1d9   : > { %1605 = vst.msk [vmem:[%s2423_s17 + $0x50] sm:$0xff] %vm1594_vm9, %v1572_v38  ;;  %v1573_v51 = vmul.f32 %v1845_v45, %v1541_v28  ;;  %v1542_v36 = vmul.f32 %v2599_v47, %v1396_v21  ;;  %v1398_v57 = vmul.f32 %v1763_v46, %v2617_v23  ;;  %v1229_v55 = vmul.f32 0.037037037, %v1197_v48  ;;  %v3010_v46 = vld [vmem:[#allocation2_spill] sm:$0xff]  ;;  %v3011_v21 = vld [vmem:[#allocation7_spill] sm:$0xff] }
 0x1da   : > { %1768 = vrsqrt.f32 %v1258_v25  ;;  %v1198_v13 = vadd.f32 %v2627_v14, %v2504_v52  ;;  %v1199_v60 = vadd.f32 %v2658_v37, %v2508_v54  ;;  %v1200_v62 = vadd.f32 %v1127_v58, %v2515_v56 }
 0x1db   : > { %1606 = vst.msk [vmem:[%s2423_s17 + $0x58] sm:$0xff] %vm1594_vm9, %v1573_v51  ;;  %v1574_v24 = vmul.f32 %v1846_v2, %v1542_v36  ;;  %v1400_v47 = vsel %vm1399_vm1, %v2617_v23, %v1398_v57  ;;  %v1405_v12 = vmul.f32 %v1765_v50, %v2634_v7  ;;  %1770 = vrsqrt.f32 %v1259_v32  ;;  %v3012_v32 = vld [vmem:[#allocation6_spill] sm:$0xff]  ;;  %v1141_v50 = vpop.permute.xlu1 %1140 }
 0x1dc   : > { %v2737_v0 = vpop.eup %1766  ;;  %v1403_v52 = vsel %vm1401_vm2, %v1402_v31, %v1400_v47  ;;  %1772 = vrsqrt.f32 %v1260_v3  ;;  %v1261_v54 = vadd.f32 1.0, %v1229_v55  ;;  %v1230_v56 = vmul.f32 0.037037037, %v1198_v13  ;;  %v1847_v31 = vld [vmem:[%s1903_s11 + $0x68] sm:$0xff]  ;;  %v3013_v3 = vld [vmem:[#allocation12_spill] sm:$0xff] }
 0x1dd   : > { %1607 = vst.msk [vmem:[%s2423_s17 + $0x60] sm:$0xff] %vm1594_vm9, %v1574_v24  ;;  %v1543_v14 = vmul.f32 %v2617_v23, %v1403_v52  ;;  %v1407_v37 = vsel %vm1406_vm3, %v2634_v7, %v1405_v12  ;;  %vm1408_vm4 = vcmp.eq.f32.partialorder %v2634_v7, 0.0  ;;  %1774 = vrsqrt.f32 %v2737_v0 }
 0x1de   : > { %v1075_v58 = vadd.f32 %v2447_v53, %v2300_v4  ;;  %v1076_v22 = vadd.f32 %v3005_v11, %v2307_v6  ;;  %v1410_v23 = vsel %vm1408_vm4, %v1409_v63, %v1407_v37  ;;  %1776 = vrsqrt.f32 %v1261_v54  ;;  %v1848_v6 = vld [vmem:[%s1903_s11 + $0x70] sm:$0xff] }
 0x1df   : > { %v1575_v29 = vmul.f32 %v1847_v31, %v1543_v14  ;;  %v1544_v1 = vmul.f32 %v2634_v7, %v1410_v23  ;;  %v1262_v19 = vadd.f32 1.0, %v1230_v56  ;;  %v1231_v20 = vmul.f32 0.037037037, %v1199_v60 }
 0x1e0   : > { %v1232_v17 = vmul.f32 0.037037037, %v1200_v62  ;;  %v1201_v44 = vadd.f32 %v1129_v15, %v2519_v59  ;;  %v1202_v16 = vadd.f32 %v1131_v43, %v2523_v61  ;;  %v1203_v4 = vadd.f32 %v1133_v27, %v1075_v58  ;;  %v1139_v61 = vpop.permute.xlu0 %1138  ;;  %v1849_v58 = vld [vmem:[%s1903_s11 + $0x78] sm:$0xff] }
 0x1e1   : > { %1608 = vst.msk [vmem:[%s2423_s17 + $0x68] sm:$0xff] %vm1594_vm9, %v1575_v29  ;;  %v1576_v53 = vmul.f32 %v1848_v6, %v1544_v1  ;;  %1778 = vrsqrt.f32 %v1262_v19  ;;  %v1263_v63 = vadd.f32 1.0, %v1231_v20  ;;  %v1204_v5 = vadd.f32 %v1135_v34, %v1076_v22 }
 0x1e2   : > { %v1077_v7 = vadd.f32 %v3007_v35, %v3006_v39  ;;  %v1264_v26 = vadd.f32 1.0, %v1232_v17  ;;  %v1233_v10 = vmul.f32 0.037037037, %v1201_v44  ;;  %v1234_v8 = vmul.f32 0.037037037, %v1202_v16 }
 0x1e3   : > { %v1078_v59 = vadd.f32 %v3009_v49, %v3008_v9  ;;  %1609 = vst.msk [vmem:[%s2423_s17 + $0x70] sm:$0xff] %vm1594_vm9, %v1576_v53  ;;  %1780 = vrsqrt.f32 %v1263_v63  ;;  %v1235_v42 = vmul.f32 0.037037037, %v1203_v4  ;;  %v1236_v38 = vmul.f32 0.037037037, %v1204_v5 }
 0x1e4   : > { %v2768_v15 = vpop.eup %1768  ;;  %1782 = vrsqrt.f32 %v1264_v26  ;;  %v1265_v40 = vadd.f32 1.0, %v1233_v10  ;;  %v1205_v18 = vadd.f32 %v1137_v30, %v1077_v7  ;;  %v1266_v41 = vadd.f32 1.0, %v1234_v8  ;;  %v1143_v19 = vpop.permute.xlu0 %1142 }
 0x1e5   : > { %v2770_v33 = vpop.eup %1770  ;;  %1784 = vrsqrt.f32 %v2768_v15  ;;  %v1206_v48 = vadd.f32 %v1139_v61, %v1078_v59  ;;  %v2778_v25 = vadd.f32 %v3011_v21, %v3010_v46  ;;  %v1079_v45 = vadd.f32 %v3013_v3, %v3012_v32  ;;  %v1850_v61 = vld [vmem:[%s1903_s11 + $0x80] sm:$0xff]  ;;  %v1852_v46 = vld [vmem:[%s1903_s11 + $0x90] sm:$0xff] }
 0x1e6   : > { %v2773_v28 = vpop.eup %1772  ;;  %1786 = vrsqrt.f32 %v2770_v33  ;;  %v1267_v57 = vadd.f32 1.0, %v1235_v42  ;;  %v1237_v55 = vmul.f32 0.037037037, %v1205_v18  ;;  %vm1413_vm5 = vcmp.eq.f32.partialorder %v2737_v0, inf }
 0x1e7   : > { %v1775_v43 = vpop.eup %1774  ;;  %1788 = vrsqrt.f32 %v2773_v28  ;;  %v1416_v13 = vand.u32 2147483648, %v2737_v0  ;;  %v1268_v60 = vadd.f32 1.0, %v1236_v38  ;;  %vm1415_vm6 = vcmp.eq.f32.partialorder %v2737_v0, 0.0 }
 0x1e8   : > { %v2783_v51 = vpop.eup %1776  ;;  %v1412_v36 = vmul.f32 %v1775_v43, %v2737_v0  ;;  %1790 = vrsqrt.f32 %v1265_v40  ;;  %v1238_v2 = vmul.f32 0.037037037, %v1206_v48  ;;  %vm1420_vm7 = vcmp.eq.f32.partialorder %v2768_v15, inf }
 0x1e9   : > { %1792 = vrsqrt.f32 %v2783_v51  ;;  %v1207_v12 = vadd.f32 %v1141_v50, %v1079_v45  ;;  %vm1422_vm8 = vcmp.eq.f32.partialorder %v2768_v15, 0.0  ;;  %v1269_v52 = vadd.f32 1.0, %v1237_v55 }
 0x1ea   : > { %v1414_v62 = vsel %vm1413_vm5, %v2737_v0, %v1412_v36  ;;  %1794 = vrsqrt.f32 %v1266_v41  ;;  %v1423_v56 = vand.u32 2147483648, %v2768_v15  ;;  %v1270_v14 = vadd.f32 1.0, %v1238_v2 }
 0x1eb   : > { %v2791_v24 = vpop.eup %1778  ;;  %v1417_v47 = vsel %vm1415_vm6, %v1416_v13, %v1414_v62  ;;  %1796 = vrsqrt.f32 %v1267_v57  ;;  %v1239_v37 = vmul.f32 0.037037037, %v1207_v12  ;;  %vm1427_vm10 = vcmp.eq.f32.partialorder %v2770_v33, inf  ;;  %v1145_v12 = vpop.permute.xlu1 %1144 }
 0x1ec   : > { %v1545_v27 = vmul.f32 %v2737_v0, %v1417_v47  ;;  %1798 = vrsqrt.f32 %v2791_v24  ;;  %vm1429_vm11 = vcmp.eq.f32.partialorder %v2770_v33, 0.0  ;;  %v1430_v22 = vand.u32 2147483648, %v2770_v33 }
 0x1ed   : > { %v2797_v54 = vpop.eup %1780  ;;  %1800 = vrsqrt.f32 %v1268_v60  ;;  %vm1434_vm12 = vcmp.eq.f32.partialorder %v2773_v28, inf  ;;  %vm1436_vm13 = vcmp.eq.f32.partialorder %v2773_v28, 0.0  ;;  %v1437_v29 = vand.u32 2147483648, %v2773_v28 }
 0x1ee   : > { %v2800_v34 = vpop.eup %1782  ;;  %v1577_v11 = vmul.f32 %v1849_v58, %v1545_v27  ;;  %1802 = vrsqrt.f32 %v2797_v54  ;;  %v1271_v1 = vadd.f32 1.0, %v1239_v37  ;;  %vm1441_vm14 = vcmp.eq.f32.partialorder %v2783_v51, inf }
 0x1ef   : > { %v1785_v0 = vpop.eup %1784  ;;  %1804 = vrsqrt.f32 %v2800_v34  ;;  %vm1443_vm15 = vcmp.eq.f32.partialorder %v2783_v51, 0.0  ;;  %v1444_v6 = vand.u32 2147483648, %v2783_v51  ;;  %v1208_v30 = vadd.f32 %v1143_v19, %v2778_v25 }
 0x1f0   : > { %v1787_v23 = vpop.eup %1786  ;;  %1610 = vst.msk [vmem:[%s2423_s17 + $0x78] sm:$0xff] %vm1594_vm9, %v1577_v11  ;;  %v1419_v31 = vmul.f32 %v1785_v0, %v2768_v15  ;;  %1806 = vrsqrt.f32 %v1269_v52  ;;  %vm1448_vm0 = vcmp.eq.f32.partialorder %v2791_v24, inf  ;;  %vm1450_vm1 = vcmp.eq.f32.partialorder %v2791_v24, 0.0  ;;  %v3014_v52 = vld [vmem:[#allocation3_spill] sm:$0xff]  ;;  %v1854_v11 = vld [vmem:[%s1903_s11 + $0xa0] sm:$0xff] }
 0x1f1   : > { %v1789_v20 = vpop.eup %1788  ;;  %v1426_v17 = vmul.f32 %v1787_v23, %v2770_v33  ;;  %1808 = vrsqrt.f32 %v1270_v14  ;;  %v1451_v43 = vand.u32 2147483648, %v2791_v24  ;;  %vm1455_vm2 = vcmp.eq.f32.partialorder %v2797_v54, inf }
 0x1f2   : > { %v2817_v44 = vpop.eup %1790  ;;  %v1421_v16 = vsel %vm1420_vm7, %v2768_v15, %v1419_v31  ;;  %v1433_v4 = vmul.f32 %v1789_v20, %v2773_v28  ;;  %1810 = vrsqrt.f32 %v1271_v1  ;;  %vm1457_vm3 = vcmp.eq.f32.partialorder %v2797_v54, 0.0  ;;  %v1855_v20 = vld [vmem:[%s1903_s11 + $0xa8] sm:$0xff] }
 0x1f3   : > { %v1793_v53 = vpop.eup %1792  ;;  %v1424_v63 = vsel %vm1422_vm8, %v1423_v56, %v1421_v16  ;;  %v1428_v5 = vsel %vm1427_vm10, %v2770_v33, %v1426_v17  ;;  %1812 = vrsqrt.f32 %v2817_v44  ;;  %v1458_v36 = vand.u32 2147483648, %v2797_v54  ;;  %v3015_v56 = vld [vmem:[#allocation8_spill] sm:$0xff] }
 0x1f4   : > { %v2831_v39 = vpop.eup %1794  ;;  %v1546_v35 = vmul.f32 %v2768_v15, %v1424_v63  ;;  %v1431_v7 = vsel %vm1429_vm11, %v1430_v22, %v1428_v5  ;;  %v1435_v26 = vsel %vm1434_vm12, %v2773_v28, %v1433_v4  ;;  %v1440_v10 = vmul.f32 %v1793_v53, %v2783_v51  ;;  %v1856_v4 = vld [vmem:[%s1903_s11 + $0xb0] sm:$0xff] }
 0x1f5   : > { %v2840_v8 = vpop.eup %1796  ;;  %v1547_v9 = vmul.f32 %v2770_v33, %v1431_v7  ;;  %v1438_v49 = vsel %vm1436_vm13, %v1437_v29, %v1435_v26  ;;  %1814 = vrsqrt.f32 %v2831_v39  ;;  %v1851_v33 = vld [vmem:[%s1903_s11 + $0x88] sm:$0xff]  ;;  %vm1462_vm4 = vcmp.eq.f32.partialorder %v2800_v34, inf }
 0x1f6   : > { %v1799_v59 = vpop.eup %1798  ;;  %v1578_v15 = vmul.f32 %v1850_v61, %v1546_v35  ;;  %v1548_v40 = vmul.f32 %v2773_v28, %v1438_v49  ;;  %v1442_v42 = vsel %vm1441_vm14, %v2783_v51, %v1440_v10  ;;  %1816 = vrsqrt.f32 %v2840_v8 }
 0x1f7   : > { %v2853_v18 = vpop.eup %1800  ;;  %v1579_v38 = vmul.f32 %v1851_v33, %v1547_v9  ;;  %v1445_v41 = vsel %vm1443_vm15, %v1444_v6, %v1442_v42  ;;  %v1447_v48 = vmul.f32 %v1799_v59, %v2791_v24  ;;  %v1465_v47 = vand.u32 2147483648, %v2800_v34  ;;  %v1857_v9 = vld [vmem:[%s1903_s11 + $0xb8] sm:$0xff] }
 0x1f8   : > { %v1803_v28 = vpop.eup %1802  ;;  %1611 = vst.msk [vmem:[%s2423_s17 + $0x80] sm:$0xff] %vm1594_vm9, %v1578_v15  ;;  %v1580_v21 = vmul.f32 %v1852_v46, %v1548_v40  ;;  %v1549_v25 = vmul.f32 %v2783_v51, %v1445_v41  ;;  %v1853_v51 = vld [vmem:[%s1903_s11 + $0x98] sm:$0xff]  ;;  %1818 = vrsqrt.f32 %v2853_v18  ;;  %v1081_v14 = vadd.f32 %v3015_v56, %v3014_v52  ;;  %v1858_v41 = vld [vmem:[%s1903_s11 + $0xc0] sm:$0xff] }
 0x1f9   : > { %v1805_v32 = vpop.eup %1804  ;;  %1612 = vst.msk [vmem:[%s2423_s17 + $0x88] sm:$0xff] %vm1594_vm9, %v1579_v38  ;;  %v1449_v3 = vsel %vm1448_vm0, %v2791_v24, %v1447_v48  ;;  %v1454_v45 = vmul.f32 %v1803_v28, %v2797_v54  ;;  %vm1464_vm5 = vcmp.eq.f32.partialorder %v2800_v34, 0.0  ;;  %v1240_v31 = vmul.f32 0.037037037, %v1208_v30 }
 0x1fa   : > { %v2874_v57 = vpop.eup %1806  ;;  %1613 = vst.msk [vmem:[%s2423_s17 + $0x90] sm:$0xff] %vm1594_vm9, %v1580_v21  ;;  %v1581_v55 = vmul.f32 %v1853_v51, %v1549_v25  ;;  %v1452_v50 = vsel %vm1450_vm1, %v1451_v43, %v1449_v3  ;;  %v1461_v13 = vmul.f32 %v1805_v32, %v2800_v34  ;;  %v1209_v19 = vadd.f32 %v1145_v12, %v1081_v14 }
 0x1fb   : > { %v2883_v60 = vpop.eup %1808  ;;  %v1550_v62 = vmul.f32 %v2791_v24, %v1452_v50  ;;  %v1456_v2 = vsel %vm1455_vm2, %v2797_v54, %v1454_v45  ;;  %1820 = vrsqrt.f32 %v2874_v57  ;;  %vm1469_vm6 = vcmp.eq.f32.partialorder %v2817_v44, inf  ;;  %v1859_v45 = vld [vmem:[%s1903_s11 + $0xc8] sm:$0xff] }
 0x1fc   : > { %v2891_v27 = vpop.eup %1810  ;;  %1614 = vst.msk [vmem:[%s2423_s17 + $0x98] sm:$0xff] %vm1594_vm9, %v1581_v55  ;;  %v1459_v24 = vsel %vm1457_vm3, %v1458_v36, %v1456_v2  ;;  %v1463_v37 = vsel %vm1462_vm4, %v2800_v34, %v1461_v13  ;;  %v1472_v16 = vand.u32 2147483648, %v2817_v44  ;;  %1822 = vrsqrt.f32 %v2883_v60  ;;  %v1860_v2 = vld [vmem:[%s1903_s11 + $0xd0] sm:$0xff] }
 0x1fd   : > { %v1813_v58 = vpop.eup %1812  ;;  %v1582_v0 = vmul.f32 %v1854_v11, %v1550_v62  ;;  %v1551_v22 = vmul.f32 %v2797_v54, %v1459_v24  ;;  %v1466_v23 = vsel %vm1464_vm5, %v1465_v47, %v1463_v37  ;;  %vm1471_vm7 = vcmp.eq.f32.partialorder %v2817_v44, 0.0 }
 0x1fe   : > { %v1552_v29 = vmul.f32 %v2800_v34, %v1466_v23  ;;  %v1468_v1 = vmul.f32 %v1813_v58, %v2817_v44  ;;  %1824 = vrsqrt.f32 %v2891_v27  ;;  %vm1476_vm8 = vcmp.eq.f32.partialorder %v2831_v39, inf  ;;  %v1862_v23 = vld [vmem:[%s1903_s11 + $0xe0] sm:$0xff] }
 0x1ff   : > { %1615 = vst.msk [vmem:[%s2423_s17 + $0xa0] sm:$0xff] %vm1594_vm9, %v1582_v0  ;;  %v1583_v17 = vmul.f32 %v1855_v20, %v1551_v22  ;;  %v1815_v54 = vpop.eup %1814  ;;  %v1479_v30 = vand.u32 2147483648, %v2831_v39  ;;  %vm1478_vm10 = vcmp.eq.f32.partialorder %v2831_v39, 0.0  ;;  %v1272_v26 = vadd.f32 1.0, %v1240_v31  ;;  %v1861_v0 = vld [vmem:[%s1903_s11 + $0xd8] sm:$0xff] }
 0x200   : > { %v1584_v6 = vmul.f32 %v1856_v4, %v1552_v29  ;;  %v1470_v34 = vsel %vm1469_vm6, %v2817_v44, %v1468_v1  ;;  %v1475_v63 = vmul.f32 %v1815_v54, %v2831_v39  ;;  %v1817_v35 = vpop.eup %1816  ;;  %v1241_v10 = vmul.f32 0.037037037, %v1209_v19 }
 0x201   : > { %1616 = vst.msk [vmem:[%s2423_s17 + $0xa8] sm:$0xff] %vm1594_vm9, %v1583_v17  ;;  %v1473_v53 = vsel %vm1471_vm7, %v1472_v16, %v1470_v34  ;;  %v1482_v61 = vmul.f32 %v1817_v35, %v2840_v8  ;;  %vm1483_vm11 = vcmp.eq.f32.partialorder %v2840_v8, inf  ;;  %v1486_v40 = vand.u32 2147483648, %v2840_v8 }
 0x202   : > { %1617 = vst.msk [vmem:[%s2423_s17 + $0xb0] sm:$0xff] %vm1594_vm9, %v1584_v6  ;;  %v1553_v5 = vmul.f32 %v2817_v44, %v1473_v53  ;;  %v1477_v7 = vsel %vm1476_vm8, %v2831_v39, %v1475_v63  ;;  %v1819_v44 = vpop.eup %1818  ;;  %1826 = vrsqrt.f32 %v1272_v26  ;;  %v1273_v42 = vadd.f32 1.0, %v1241_v10  ;;  %v1865_v26 = vld [vmem:[%s1903_s11 + $0xf8] sm:$0xff] }
 0x203   : > { %v1480_v59 = vsel %vm1478_vm10, %v1479_v30, %v1477_v7  ;;  %v1484_v33 = vsel %vm1483_vm11, %v2840_v8, %v1482_v61  ;;  %vm1485_vm12 = vcmp.eq.f32.partialorder %v2840_v8, 0.0  ;;  %v1489_v38 = vmul.f32 %v1819_v44, %v2853_v18  ;;  %v1864_v30 = vld [vmem:[%s1903_s11 + $0xf0] sm:$0xff] }
 0x204   : > { %v1585_v49 = vmul.f32 %v1857_v9, %v1553_v5  ;;  %v1554_v15 = vmul.f32 %v2831_v39, %v1480_v59  ;;  %vm1490_vm13 = vcmp.eq.f32.partialorder %v2853_v18, inf  ;;  %v1487_v43 = vsel %vm1485_vm12, %v1486_v40, %v1484_v33 }
 0x205   : > { %v1493_v39 = vand.u32 2147483648, %v2853_v18  ;;  %1828 = vrsqrt.f32 %v1273_v42  ;;  %v1821_v28 = vpop.eup %1820  ;;  %v1555_v46 = vmul.f32 %v2840_v8, %v1487_v43  ;;  %v1491_v21 = vsel %vm1490_vm13, %v2853_v18, %v1489_v38 }
 0x206   : > { %1618 = vst.msk [vmem:[%s2423_s17 + $0xb8] sm:$0xff] %vm1594_vm9, %v1585_v49  ;;  %v1586_v48 = vmul.f32 %v1858_v41, %v1554_v15  ;;  %vm1492_vm14 = vcmp.eq.f32.partialorder %v2853_v18, 0.0  ;;  %v1823_v25 = vpop.eup %1822  ;;  %v1496_v3 = vmul.f32 %v1821_v28, %v2874_v57  ;;  %vm1497_vm15 = vcmp.eq.f32.partialorder %v2874_v57, inf }
 0x207   : > { %v1494_v32 = vsel %vm1492_vm14, %v1493_v39, %v1491_v21  ;;  %vm1499_vm0 = vcmp.eq.f32.partialorder %v2874_v57, 0.0  ;;  %v1587_v36 = vmul.f32 %v1859_v45, %v1555_v46  ;;  %v1500_v51 = vand.u32 2147483648, %v2874_v57 }
 0x208   : > { %1619 = vst.msk [vmem:[%s2423_s17 + $0xc0] sm:$0xff] %vm1594_vm9, %v1586_v48  ;;  %v1556_v8 = vmul.f32 %v2853_v18, %v1494_v32  ;;  %v1503_v55 = vmul.f32 %v1823_v25, %v2883_v60  ;;  %v1825_v50 = vpop.eup %1824  ;;  %v1498_v13 = vsel %vm1497_vm15, %v2874_v57, %v1496_v3  ;;  %vm1504_vm1 = vcmp.eq.f32.partialorder %v2883_v60, inf }
 0x209   : > { %vm1506_vm2 = vcmp.eq.f32.partialorder %v2883_v60, 0.0  ;;  %v1507_v62 = vand.u32 2147483648, %v2883_v60  ;;  %1620 = vst.msk [vmem:[%s2423_s17 + $0xc8] sm:$0xff] %vm1594_vm9, %v1587_v36  ;;  %v1501_v18 = vsel %vm1499_vm0, %v1500_v51, %v1498_v13  ;;  %v1510_v52 = vmul.f32 %v1825_v50, %v2891_v27 }
 0x20a   : > { %v1588_v47 = vmul.f32 %v1860_v2, %v1556_v8  ;;  %v1505_v12 = vsel %vm1504_vm1, %v2883_v60, %v1503_v55  ;;  %v1557_v56 = vmul.f32 %v2874_v57, %v1501_v18  ;;  %vm1511_vm3 = vcmp.eq.f32.partialorder %v2891_v27, inf }
 0x20b   : > { %v1508_v14 = vsel %vm1506_vm2, %v1507_v62, %v1505_v12  ;;  %v1514_v24 = vand.u32 2147483648, %v2891_v27  ;;  %v1512_v58 = vsel %vm1511_vm3, %v2891_v27, %v1510_v52  ;;  %vm1513_vm4 = vcmp.eq.f32.partialorder %v2891_v27, 0.0 }
 0x20c   : > { %1621 = vst.msk [vmem:[%s2423_s17 + $0xd0] sm:$0xff] %vm1594_vm9, %v1588_v47  ;;  %v1558_v37 = vmul.f32 %v2883_v60, %v1508_v14  ;;  %v1827_v11 = vpop.eup %1826  ;;  %v1589_v57 = vmul.f32 %v1861_v0, %v1557_v56  ;;  %v1863_v60 = vld [vmem:[%s1903_s11 + $0xe8] sm:$0xff] }
 0x20d   : > { %v1515_v22 = vsel %vm1513_vm4, %v1514_v24, %v1512_v58  ;;  %1830 = vrsqrt.f32 %v1827_v11  ;;  %vm1518_vm5 = vcmp.eq.f32.partialorder %v1827_v11, inf  ;;  %v1521_v54 = vand.u32 2147483648, %v1827_v11 }
 0x20e   : > { %v1590_v31 = vmul.f32 %v1862_v23, %v1558_v37  ;;  %v1559_v29 = vmul.f32 %v2891_v27, %v1515_v22  ;;  %1622 = vst.msk [vmem:[%s2423_s17 + $0xd8] sm:$0xff] %vm1594_vm9, %v1589_v57  ;;  %vm1520_vm6 = vcmp.eq.f32.partialorder %v1827_v11, 0.0 }
 0x20f   : > { %v1829_v1 = vpop.eup %1828 }
 0x210   : > { %1623 = vst.msk [vmem:[%s2423_s17 + $0xe0] sm:$0xff] %vm1594_vm9, %v1590_v31  ;;  %v1591_v19 = vmul.f32 %v1863_v60, %v1559_v29  ;;  %1832 = vrsqrt.f32 %v1829_v1  ;;  %vm1525_vm7 = vcmp.eq.f32.partialorder %v1829_v1, inf  ;;  %v1528_v34 = vand.u32 2147483648, %v1829_v1 }
 0x211   : > { %vm1527_vm8 = vcmp.eq.f32.partialorder %v1829_v1, 0.0 }
 0x212   : > { %1624 = vst.msk [vmem:[%s2423_s17 + $0xe8] sm:$0xff] %vm1594_vm9, %v1591_v19 }
 0x217   : > { %v1831_v20 = vpop.eup %1830 }
 0x218   : > { %v1517_v17 = vmul.f32 %v1831_v20, %v1827_v11 }
 0x21a   : > { %v1833_v16 = vpop.eup %1832  ;;  %v1519_v27 = vsel %vm1518_vm5, %v1827_v11, %v1517_v17 }
 0x21b   : > { %v1524_v4 = vmul.f32 %v1833_v16, %v1829_v1  ;;  %v1522_v6 = vsel %vm1520_vm6, %v1521_v54, %v1519_v27 }
 0x21c   : > { %v1560_v53 = vmul.f32 %v1827_v11, %v1522_v6 }
 0x21d   : > { %v1526_v63 = vsel %vm1525_vm7, %v1829_v1, %v1524_v4 }
 0x21e   : > { %v1529_v5 = vsel %vm1527_vm8, %v1528_v34, %v1526_v63  ;;  %v1592_v35 = vmul.f32 %v1864_v30, %v1560_v53 }
 0x21f   : > { %v1561_v7 = vmul.f32 %v1829_v1, %v1529_v5 }
 0x220   : > { %1625 = vst.msk [vmem:[%s2423_s17 + $0xf0] sm:$0xff] %vm1594_vm9, %v1592_v35 }
 0x221   : > { %v1593_v10 = vmul.f32 %v1865_v26, %v1561_v7 }
 0x223   : > { %1626 = vst.msk [vmem:[%s2423_s17 + $0xf8] sm:$0xff] %vm1594_vm9, %v1593_v10 }
 0x224 PF: > { %s11_s6 = sadd.s32 1, %s1872_s6  }
 0x225   : > { %p8_p4 = scmp.ge.s32.totalorder %s11_s6, 4  }
 0x227   :  { %10 = sbr.rel (!%p8_p4) target bundleno = 1 (0x1), region = 54 }

</bundles_post_ra>
